<compile_context>
chip_gen: v6e
topology: v6e:2x2x1
jax: 0.10.0
libtpu: 0.0.40
codegen_flags: <defaults>
</compile_context>

<pallas_src>
import functools

import jax
import jax.numpy as jnp
from jax.experimental import pallas as pl
from jax.experimental.pallas import tpu as pltpu


# ----------------------------------------------------------------------------
# In-kernel helpers (operate on VMEM-resident f32 values)
# ----------------------------------------------------------------------------
def _layernorm(x, g, b, eps=1e-5):   # eps matches torch.nn.LayerNorm default
    x = x.astype(jnp.float32)
    mu = jnp.mean(x, axis=-1, keepdims=True)
    var = jnp.mean((x - mu) ** 2, axis=-1, keepdims=True)
    return (x - mu) * jax.lax.rsqrt(var + eps) * g + b


def _sdpa(q, k, v, scale, mask=None):
    # q: [B, Sq, D], k/v: [B, Sk, D]; contract last dims directly (no k.T copy).
    s = jnp.einsum("bqd,bkd->bqk", q, k, preferred_element_type=jnp.float32) * scale
    if mask is not None:
        s = s + mask
    m = jnp.max(s, axis=-1, keepdims=True)
    p = jnp.exp(s - m)
    l = jnp.sum(p, axis=-1, keepdims=True)
    o = jnp.einsum("bqk,bkd->bqd", p, v, preferred_element_type=jnp.float32)
    return o * pl.reciprocal(l, approx=True)   # divide -> EUP reciprocal (free slot)


# ----------------------------------------------------------------------------
# Fused kernel: vision embed -> Q-Former -> LM projection -> LM decoder -> head
# ----------------------------------------------------------------------------
def _vqa_fused_kernel(
    # inputs
    patches_ref, txt_ref,
    patch_w_ref, patch_b_ref, vis_g_ref, vis_b_ref,
    qtok_ref, q_w_ref, q_b_ref, kv_w_ref, kv_b_ref, o_w_ref, o_b_ref,
    ln1_g_ref, ln1_b_ref, ffn_w1_ref, ffn_b1_ref, ffn_w2_ref, ffn_b2_ref,
    ln2_g_ref, ln2_b_ref, proj_w_ref, proj_b_ref,
    lm_qkv_w_ref, lm_qkv_b_ref, lm_o_w_ref, lm_o_b_ref, lm_g_ref, lm_b_ref,
    head_w_ref, head_b_ref,
    # outputs
    logits_ref, pred_ref,
    *, B, N, Q, T, Dv, Dl, V, scale_qf, scale_lm,
):
    f32 = jnp.float32

    # -- 1) VisionPixelEmbedding: patch-conv as matmul + LayerNorm ------------
    patches = patches_ref[...].reshape(B * N, -1).astype(f32)
    vis = jnp.dot(patches, patch_w_ref[...], preferred_element_type=f32) + patch_b_ref[...]
    vis = _layernorm(vis, vis_g_ref[...], vis_b_ref[...])                     # [B*N, Dv]

    # -- 2) Q-Former: learnable queries cross-attend to visual features -------
    qt = qtok_ref[...].astype(f32)                                            # [Q, Dv]
    q = jnp.dot(qt, q_w_ref[...], preferred_element_type=f32) + q_b_ref[...]  # [Q, Dv]
    # fused K/V projection (one MXU pass, 2*Dv-wide output)
    kv = jnp.dot(vis, kv_w_ref[...], preferred_element_type=f32) + kv_b_ref[...]
    k = kv[:, :Dv].reshape(B, N, Dv)
    v = kv[:, Dv:].reshape(B, N, Dv)
    qb = jnp.broadcast_to(q[None], (B, Q, Dv))
    attn = _sdpa(qb, k, v, scale_qf).reshape(B * Q, Dv)
    attn = jnp.dot(attn, o_w_ref[...], preferred_element_type=f32) + o_b_ref[...]
    qres = jnp.broadcast_to(qt[None], (B, Q, Dv)).reshape(B * Q, Dv)
    h = _layernorm(qres + attn, ln1_g_ref[...], ln1_b_ref[...])
    ff = jnp.dot(h, ffn_w1_ref[...], preferred_element_type=f32) + ffn_b1_ref[...]
    ff = jax.nn.gelu(ff)
    ff = jnp.dot(ff, ffn_w2_ref[...], preferred_element_type=f32) + ffn_b2_ref[...]
    h = _layernorm(h + ff, ln2_g_ref[...], ln2_b_ref[...])                    # [B*Q, Dv]

    # -- 3) project query outputs to LM space, concat with text embeddings ----
    qtok = (jnp.dot(h, proj_w_ref[...], preferred_element_type=f32)
            + proj_b_ref[...]).reshape(B, Q, Dl)
    txt = txt_ref[...].astype(f32)                                            # [B, T, Dl]
    seq = jnp.concatenate([qtok, txt], axis=1)                                # [B, S, Dl]
    S = Q + T
    seq2 = seq.reshape(B * S, Dl)

    # -- 4) LM decoder block: fused QKV, prefix-LM mask (queries bidirectional,
    #       text causal), self-attention, output proj, residual + LayerNorm ---
    qkv = jnp.dot(seq2, lm_qkv_w_ref[...], preferred_element_type=f32) + lm_qkv_b_ref[...]
    lq = qkv[:, 0 * Dl:1 * Dl].reshape(B, S, Dl)
    lk = qkv[:, 1 * Dl:2 * Dl].reshape(B, S, Dl)
    lv = qkv[:, 2 * Dl:3 * Dl].reshape(B, S, Dl)
    row = jax.lax.broadcasted_iota(jnp.int32, (S, S), 0)
    col = jax.lax.broadcasted_iota(jnp.int32, (S, S), 1)
    allowed = jnp.logical_or(col < Q, col <= row)
    mask = jnp.where(allowed, 0.0, -1e9).astype(f32)[None]
    lo = _sdpa(lq, lk, lv, scale_lm, mask=mask).reshape(B * S, Dl)
    lo = jnp.dot(lo, lm_o_w_ref[...], preferred_element_type=f32) + lm_o_b_ref[...]
    hs = _layernorm(seq2 + lo, lm_g_ref[...], lm_b_ref[...])                  # [B*S, Dl]

    # -- 5) LM head on the LAST position only + greedy argmax -----------------
    last = hs.reshape(B, S, Dl)[:, S - 1:S, :].reshape(B, Dl)
    logits = jnp.dot(last, head_w_ref[...], preferred_element_type=f32) + head_b_ref[...]
    logits_ref[...] = logits.astype(logits_ref.dtype)
    ids = jax.lax.broadcasted_iota(jnp.int32, (B, V), 1)
    mx = jnp.max(logits, axis=-1, keepdims=True)
    pred = jnp.min(jnp.where(logits == mx, ids, V), axis=-1, keepdims=True)   # first-max argmax
    pred_ref[...] = pred.astype(pred_ref.dtype)


# ----------------------------------------------------------------------------
# Model wrapper (parameters initialized deterministically; no checkpoint load)
# ----------------------------------------------------------------------------
class ViBlipVQAPallas:
    def __init__(self, key, *, img_hw=16, img_c=4, patch=4, vis_dim=32,
                 num_query_tokens=8, lm_dim=32, ffn_dim=64, vocab=64, text_len=8):
        self.patch = patch
        self.img_hw = img_hw
        self.img_c = img_c
        self.vis_dim = vis_dim
        self.num_query_tokens = num_query_tokens
        self.lm_dim = lm_dim
        self.ffn_dim = ffn_dim
        self.vocab = vocab
        self.text_len = text_len

        patch_dim = patch * patch * img_c
        ks = jax.random.split(key, 20)
        init = lambda k, shp, s=0.05: (s * jax.random.normal(k, shp)).astype(jnp.float32)
        zeros = lambda shp: jnp.zeros(shp, jnp.float32)
        ones = lambda shp: jnp.ones(shp, jnp.float32)

        Dv, Dl, F, V = vis_dim, lm_dim, ffn_dim, vocab
        p = {}
        # VisionPixelEmbedding (patch conv == unfold + matmul) + LayerNorm
        p["patch_w"] = init(ks[0], (patch_dim, Dv)); p["patch_b"] = zeros((1, Dv))
        p["vis_ln_g"] = ones((1, Dv)); p["vis_ln_b"] = zeros((1, Dv))
        # Q-Former: learnable query tokens + cross-attention block (K/V fused)
        p["query_tokens"] = init(ks[1], (num_query_tokens, Dv))
        p["q_w"] = init(ks[2], (Dv, Dv)); p["q_b"] = zeros((1, Dv))
        p["kv_w"] = jnp.concatenate([init(ks[3], (Dv, Dv)), init(ks[4], (Dv, Dv))], axis=1)
        p["kv_b"] = zeros((1, 2 * Dv))
        p["o_w"] = init(ks[5], (Dv, Dv)); p["o_b"] = zeros((1, Dv))
        p["qf_ln1_g"] = ones((1, Dv)); p["qf_ln1_b"] = zeros((1, Dv))
        p["qf_ffn_w1"] = init(ks[6], (Dv, F)); p["qf_ffn_b1"] = zeros((1, F))
        p["qf_ffn_w2"] = init(ks[7], (F, Dv)); p["qf_ffn_b2"] = zeros((1, Dv))
        p["qf_ln2_g"] = ones((1, Dv)); p["qf_ln2_b"] = zeros((1, Dv))
        # LM projection + token embedding + tiny decoder block (Q/K/V fused) + head
        p["lm_proj_w"] = init(ks[8], (Dv, Dl)); p["lm_proj_b"] = zeros((1, Dl))
        p["tok_emb"] = init(ks[9], (V, Dl))
        p["lm_qkv_w"] = jnp.concatenate(
            [init(ks[10], (Dl, Dl)), init(ks[11], (Dl, Dl)), init(ks[12], (Dl, Dl))], axis=1)
        p["lm_qkv_b"] = zeros((1, 3 * Dl))
        p["lm_o_w"] = init(ks[13], (Dl, Dl)); p["lm_o_b"] = zeros((1, Dl))
        p["lm_ln_g"] = ones((1, Dl)); p["lm_ln_b"] = zeros((1, Dl))
        p["lm_head_w"] = init(ks[14], (Dl, V)); p["lm_head_b"] = zeros((1, V))
        self.params = p

        self._fwd = jax.jit(self._forward)

    # ---- glue: unfold NCHW image into flattened patches ----------------------
    # TODO(synk): at real image sizes this unfold should be folded into the kernel
    # via an index_map over (batch, patch-row) tiles of the NHWC image.
    def _extract_patches(self, image_nchw):
        B = image_nchw.shape[0]
        ph = pw = self.patch
        x = jnp.transpose(image_nchw, (0, 2, 3, 1))            # NCHW -> NHWC
        H, W, C = x.shape[1], x.shape[2], x.shape[3]
        x = x.reshape(B, H // ph, ph, W // pw, pw, C)
        x = jnp.transpose(x, (0, 1, 3, 2, 4, 5))                # [B, nh, nw, ph, pw, C]
        n_patches = (H // ph) * (W // pw)
        return x.reshape(B, n_patches, ph * pw * C), n_patches

    def _forward(self, question_ids, image_nchw):
        """question_ids: int32 [B, T] (already tokenized); image_nchw: f32 [B,C,H,W]."""
        # TODO(synk): checkpoint load, OCR extraction, caption extraction and the
        # HF tokenizer / string preprocessing / batch_decode have no numeric Pallas
        # equivalent; question_ids stands in for the processed text input.
        p = self.params
        B = image_nchw.shape[0]
        T = question_ids.shape[1]
        Dv, Dl, Q, V = self.vis_dim, self.lm_dim, self.num_query_tokens, self.vocab

        patches, N = self._extract_patches(image_nchw)          # [B, N, patch_dim]
        # TODO(synk): token-embedding gather kept as a (cheap) XLA op outside the kernel.
        txt = jnp.take(p["tok_emb"], question_ids, axis=0)      # [B, T, Dl]

        order = ["patch_w", "patch_b", "vis_ln_g", "vis_ln_b",
                 "query_tokens", "q_w", "q_b", "kv_w", "kv_b", "o_w", "o_b",
                 "qf_ln1_g", "qf_ln1_b", "qf_ffn_w1", "qf_ffn_b1",
                 "qf_ffn_w2", "qf_ffn_b2", "qf_ln2_g", "qf_ln2_b",
                 "lm_proj_w", "lm_proj_b",
                 "lm_qkv_w", "lm_qkv_b", "lm_o_w", "lm_o_b", "lm_ln_g", "lm_ln_b",
                 "lm_head_w", "lm_head_b"]
        args = [patches, txt] + [p[k] for k in order]

        def fullspec(a):
            return pl.BlockSpec(a.shape, lambda i, _nd=a.ndim: (0,) * _nd)

        kern = functools.partial(
            _vqa_fused_kernel,
            B=B, N=N, Q=Q, T=T, Dv=Dv, Dl=Dl, V=V,
            scale_qf=1.0 / (Dv ** 0.5), scale_lm=1.0 / (Dl ** 0.5))

        logits, pred = pl.pallas_call(
            kern,
            out_shape=(jax.ShapeDtypeStruct((B, V), jnp.float32),
                       jax.ShapeDtypeStruct((B, 1), jnp.int32)),
            grid=(1,),
            in_specs=[fullspec(a) for a in args],
            out_specs=(pl.BlockSpec((B, V), lambda i: (0, 0)),
                       pl.BlockSpec((B, 1), lambda i: (0, 0))),
            compiler_params=pltpu.CompilerParams(
                dimension_semantics=("arbitrary",)),
        )(*args)

        # TODO(synk): full autoregressive beam-search generate() is not a kernel;
        # a single greedy decode step (last-position argmax) is implemented.
        return pred.reshape(B), logits

    def forward(self, question_ids, image_nchw):
        return self._fwd(question_ids, image_nchw)


# ----------------------------------------------------------------------------
if __name__ == "__main__":
    key = jax.random.PRNGKey(0)
    k_model, k_img, k_txt = jax.random.split(key, 3)

    model = ViBlipVQAPallas(k_model)

    B, C, H, W = 2, 4, 16, 16
    T = 8
    image = jax.random.normal(k_img, (B, C, H, W), dtype=jnp.float32)        # NCHW
    question_ids = jax.random.randint(k_txt, (B, T), 0, model.vocab, dtype=jnp.int32)

    pred_ids, logits = model.forward(question_ids, image)
    jax.block_until_ready((pred_ids, logits))
    assert pred_ids.shape == (B,)
    assert logits.shape == (B, model.vocab)
    print("KERNEL_OK")
</pallas_src>

<mosaic_0001>
module attributes {stable_mosaic.version = 11 : i64} {
  func.func @_vqa_fused_kernel(%arg0: i32, %arg1: memref<2x16x64xf32, #tpu.memory_space<vmem>>, %arg2: memref<2x8x32xf32, #tpu.memory_space<vmem>>, %arg3: memref<64x32xf32, #tpu.memory_space<vmem>>, %arg4: memref<1x32xf32, #tpu.memory_space<vmem>>, %arg5: memref<1x32xf32, #tpu.memory_space<vmem>>, %arg6: memref<1x32xf32, #tpu.memory_space<vmem>>, %arg7: memref<8x32xf32, #tpu.memory_space<vmem>>, %arg8: memref<32x32xf32, #tpu.memory_space<vmem>>, %arg9: memref<1x32xf32, #tpu.memory_space<vmem>>, %arg10: memref<32x64xf32, #tpu.memory_space<vmem>>, %arg11: memref<1x64xf32, #tpu.memory_space<vmem>>, %arg12: memref<32x32xf32, #tpu.memory_space<vmem>>, %arg13: memref<1x32xf32, #tpu.memory_space<vmem>>, %arg14: memref<1x32xf32, #tpu.memory_space<vmem>>, %arg15: memref<1x32xf32, #tpu.memory_space<vmem>>, %arg16: memref<32x64xf32, #tpu.memory_space<vmem>>, %arg17: memref<1x64xf32, #tpu.memory_space<vmem>>, %arg18: memref<64x32xf32, #tpu.memory_space<vmem>>, %arg19: memref<1x32xf32, #tpu.memory_space<vmem>>, %arg20: memref<1x32xf32, #tpu.memory_space<vmem>>, %arg21: memref<1x32xf32, #tpu.memory_space<vmem>>, %arg22: memref<32x32xf32, #tpu.memory_space<vmem>>, %arg23: memref<1x32xf32, #tpu.memory_space<vmem>>, %arg24: memref<32x96xf32, #tpu.memory_space<vmem>>, %arg25: memref<1x96xf32, #tpu.memory_space<vmem>>, %arg26: memref<32x32xf32, #tpu.memory_space<vmem>>, %arg27: memref<1x32xf32, #tpu.memory_space<vmem>>, %arg28: memref<1x32xf32, #tpu.memory_space<vmem>>, %arg29: memref<1x32xf32, #tpu.memory_space<vmem>>, %arg30: memref<32x64xf32, #tpu.memory_space<vmem>>, %arg31: memref<1x64xf32, #tpu.memory_space<vmem>>, %arg32: memref<2x64xf32, #tpu.memory_space<vmem>>, %arg33: memref<2x1xi32, #tpu.memory_space<vmem>>) attributes {dimension_semantics = [#tpu.dimension_semantics<arbitrary>], iteration_bounds = array<i64: 1>, scalar_prefetch = 0 : i64, scratch_operands = 0 : i64, tpu.core_type = #tpu.core_type<tc>, window_params = [{pipeline_mode = #tpu.pipeline_mode<synchronous>, transform_indices = @transform_0, window_bounds = array<i64: 2, 16, 64>}, {pipeline_mode = #tpu.pipeline_mode<synchronous>, transform_indices = @transform_1, window_bounds = array<i64: 2, 8, 32>}, {pipeline_mode = #tpu.pipeline_mode<synchronous>, transform_indices = @transform_2, window_bounds = array<i64: 64, 32>}, {pipeline_mode = #tpu.pipeline_mode<synchronous>, transform_indices = @transform_3, window_bounds = array<i64: 1, 32>}, {pipeline_mode = #tpu.pipeline_mode<synchronous>, transform_indices = @transform_4, window_bounds = array<i64: 1, 32>}, {pipeline_mode = #tpu.pipeline_mode<synchronous>, transform_indices = @transform_5, window_bounds = array<i64: 1, 32>}, {pipeline_mode = #tpu.pipeline_mode<synchronous>, transform_indices = @transform_6, window_bounds = array<i64: 8, 32>}, {pipeline_mode = #tpu.pipeline_mode<synchronous>, transform_indices = @transform_7, window_bounds = array<i64: 32, 32>}, {pipeline_mode = #tpu.pipeline_mode<synchronous>, transform_indices = @transform_8, window_bounds = array<i64: 1, 32>}, {pipeline_mode = #tpu.pipeline_mode<synchronous>, transform_indices = @transform_9, window_bounds = array<i64: 32, 64>}, {pipeline_mode = #tpu.pipeline_mode<synchronous>, transform_indices = @transform_10, window_bounds = array<i64: 1, 64>}, {pipeline_mode = #tpu.pipeline_mode<synchronous>, transform_indices = @transform_11, window_bounds = array<i64: 32, 32>}, {pipeline_mode = #tpu.pipeline_mode<synchronous>, transform_indices = @transform_12, window_bounds = array<i64: 1, 32>}, {pipeline_mode = #tpu.pipeline_mode<synchronous>, transform_indices = @transform_13, window_bounds = array<i64: 1, 32>}, {pipeline_mode = #tpu.pipeline_mode<synchronous>, transform_indices = @transform_14, window_bounds = array<i64: 1, 32>}, {pipeline_mode = #tpu.pipeline_mode<synchronous>, transform_indices = @transform_15, window_bounds = array<i64: 32, 64>}, {pipeline_mode = #tpu.pipeline_mode<synchronous>, transform_indices = @transform_16, window_bounds = array<i64: 1, 64>}, {pipeline_mode = #tpu.pipeline_mode<synchronous>, transform_indices = @transform_17, window_bounds = array<i64: 64, 32>}, {pipeline_mode = #tpu.pipeline_mode<synchronous>, transform_indices = @transform_18, window_bounds = array<i64: 1, 32>}, {pipeline_mode = #tpu.pipeline_mode<synchronous>, transform_indices = @transform_19, window_bounds = array<i64: 1, 32>}, {pipeline_mode = #tpu.pipeline_mode<synchronous>, transform_indices = @transform_20, window_bounds = array<i64: 1, 32>}, {pipeline_mode = #tpu.pipeline_mode<synchronous>, transform_indices = @transform_21, window_bounds = array<i64: 32, 32>}, {pipeline_mode = #tpu.pipeline_mode<synchronous>, transform_indices = @transform_22, window_bounds = array<i64: 1, 32>}, {pipeline_mode = #tpu.pipeline_mode<synchronous>, transform_indices = @transform_23, window_bounds = array<i64: 32, 96>}, {pipeline_mode = #tpu.pipeline_mode<synchronous>, transform_indices = @transform_24, window_bounds = array<i64: 1, 96>}, {pipeline_mode = #tpu.pipeline_mode<synchronous>, transform_indices = @transform_25, window_bounds = array<i64: 32, 32>}, {pipeline_mode = #tpu.pipeline_mode<synchronous>, transform_indices = @transform_26, window_bounds = array<i64: 1, 32>}, {pipeline_mode = #tpu.pipeline_mode<synchronous>, transform_indices = @transform_27, window_bounds = array<i64: 1, 32>}, {pipeline_mode = #tpu.pipeline_mode<synchronous>, transform_indices = @transform_28, window_bounds = array<i64: 1, 32>}, {pipeline_mode = #tpu.pipeline_mode<synchronous>, transform_indices = @transform_29, window_bounds = array<i64: 32, 64>}, {pipeline_mode = #tpu.pipeline_mode<synchronous>, transform_indices = @transform_30, window_bounds = array<i64: 1, 64>}, {pipeline_mode = #tpu.pipeline_mode<synchronous>, transform_indices = @transform_31, window_bounds = array<i64: 2, 64>}, {pipeline_mode = #tpu.pipeline_mode<synchronous>, transform_indices = @transform_32, window_bounds = array<i64: 2, 1>}]} {
    %c0 = arith.constant 0 : index
    %c0_0 = arith.constant 0 : index
    %c0_1 = arith.constant 0 : index
    %0 = vector.load %arg1[%c0, %c0_0, %c0_1] : memref<2x16x64xf32, #tpu.memory_space<vmem>>, vector<2x16x64xf32>
    %1 = vector.shape_cast %0 : vector<2x16x64xf32> to vector<32x64xf32>
    %c0_2 = arith.constant 0 : index
    %c0_3 = arith.constant 0 : index
    %2 = vector.load %arg3[%c0_2, %c0_3] : memref<64x32xf32, #tpu.memory_space<vmem>>, vector<64x32xf32>
    %cst = arith.constant dense<0.000000e+00> : vector<32x32xf32>
    %3 = tpu.matmul %1, %2, %cst {dimension_numbers = #tpu.dot_dimension_numbers<[1], [0], [0], [1], [0, 0, 1, 1], [], []>} : vector<32x64xf32>, vector<64x32xf32>, vector<32x32xf32> -> vector<32x32xf32>
    %c0_4 = arith.constant 0 : index
    %c0_5 = arith.constant 0 : index
    %4 = vector.load %arg4[%c0_4, %c0_5] : memref<1x32xf32, #tpu.memory_space<vmem>>, vector<1x32xf32>
    %5 = vector.broadcast %4 : vector<1x32xf32> to vector<32x32xf32>
    %6 = arith.addf %3, %5 : vector<32x32xf32>
    %c0_6 = arith.constant 0 : index
    %c0_7 = arith.constant 0 : index
    %7 = vector.load %arg5[%c0_6, %c0_7] : memref<1x32xf32, #tpu.memory_space<vmem>>, vector<1x32xf32>
    %c0_8 = arith.constant 0 : index
    %c0_9 = arith.constant 0 : index
    %8 = vector.load %arg6[%c0_8, %c0_9] : memref<1x32xf32, #tpu.memory_space<vmem>>, vector<1x32xf32>
    %cst_10 = arith.constant dense<0.000000e+00> : vector<32xf32>
    %9 = vector.multi_reduction <add>, %6, %cst_10 [1] : vector<32x32xf32> to vector<32xf32>
    %10 = vector.shape_cast %9 : vector<32xf32> to vector<32x1xf32>
    %cst_11 = arith.constant 3.200000e+01 : f32
    %11 = vector.broadcast %cst_11 : f32 to vector<32x1xf32>
    %12 = arith.divf %10, %11 : vector<32x1xf32>
    %13 = vector.broadcast %12 : vector<32x1xf32> to vector<32x32xf32>
    %14 = arith.subf %6, %13 : vector<32x32xf32>
    %15 = arith.mulf %14, %14 : vector<32x32xf32>
    %cst_12 = arith.constant dense<0.000000e+00> : vector<32xf32>
    %16 = vector.multi_reduction <add>, %15, %cst_12 [1] : vector<32x32xf32> to vector<32xf32>
    %17 = vector.shape_cast %16 : vector<32xf32> to vector<32x1xf32>
    %cst_13 = arith.constant 3.200000e+01 : f32
    %18 = vector.broadcast %cst_13 : f32 to vector<32x1xf32>
    %19 = arith.divf %17, %18 : vector<32x1xf32>
    %20 = vector.broadcast %12 : vector<32x1xf32> to vector<32x32xf32>
    %21 = arith.subf %6, %20 : vector<32x32xf32>
    %cst_14 = arith.constant 9.99999974E-6 : f32
    %22 = vector.broadcast %cst_14 : f32 to vector<32x1xf32>
    %23 = arith.addf %19, %22 : vector<32x1xf32>
    %24 = math.rsqrt %23 : vector<32x1xf32>
    %25 = vector.broadcast %24 : vector<32x1xf32> to vector<32x32xf32>
    %26 = arith.mulf %21, %25 : vector<32x32xf32>
    %27 = vector.broadcast %7 : vector<1x32xf32> to vector<32x32xf32>
    %28 = arith.mulf %26, %27 : vector<32x32xf32>
    %29 = vector.broadcast %8 : vector<1x32xf32> to vector<32x32xf32>
    %30 = arith.addf %28, %29 : vector<32x32xf32>
    %c0_15 = arith.constant 0 : index
    %c0_16 = arith.constant 0 : index
    %31 = vector.load %arg7[%c0_15, %c0_16] : memref<8x32xf32, #tpu.memory_space<vmem>>, vector<8x32xf32>
    %c0_17 = arith.constant 0 : index
    %c0_18 = arith.constant 0 : index
    %32 = vector.load %arg8[%c0_17, %c0_18] : memref<32x32xf32, #tpu.memory_space<vmem>>, vector<32x32xf32>
    %cst_19 = arith.constant dense<0.000000e+00> : vector<8x32xf32>
    %33 = tpu.matmul %31, %32, %cst_19 {dimension_numbers = #tpu.dot_dimension_numbers<[1], [0], [0], [1], [0, 0, 1, 1], [], []>} : vector<8x32xf32>, vector<32x32xf32>, vector<8x32xf32> -> vector<8x32xf32>
    %c0_20 = arith.constant 0 : index
    %c0_21 = arith.constant 0 : index
    %34 = vector.load %arg9[%c0_20, %c0_21] : memref<1x32xf32, #tpu.memory_space<vmem>>, vector<1x32xf32>
    %35 = vector.broadcast %34 : vector<1x32xf32> to vector<8x32xf32>
    %36 = arith.addf %33, %35 : vector<8x32xf32>
    %c0_22 = arith.constant 0 : index
    %c0_23 = arith.constant 0 : index
    %37 = vector.load %arg10[%c0_22, %c0_23] : memref<32x64xf32, #tpu.memory_space<vmem>>, vector<32x64xf32>
    %cst_24 = arith.constant dense<0.000000e+00> : vector<32x64xf32>
    %38 = tpu.matmul %30, %37, %cst_24 {dimension_numbers = #tpu.dot_dimension_numbers<[1], [0], [0], [1], [0, 0, 1, 1], [], []>} : vector<32x32xf32>, vector<32x64xf32>, vector<32x64xf32> -> vector<32x64xf32>
    %c0_25 = arith.constant 0 : index
    %c0_26 = arith.constant 0 : index
    %39 = vector.load %arg11[%c0_25, %c0_26] : memref<1x64xf32, #tpu.memory_space<vmem>>, vector<1x64xf32>
    %40 = vector.broadcast %39 : vector<1x64xf32> to vector<32x64xf32>
    %41 = arith.addf %38, %40 : vector<32x64xf32>
    %42 = vector.extract_strided_slice %41 {offsets = [0, 0], sizes = [32, 32], strides = [1, 1]} : vector<32x64xf32> to vector<32x32xf32>
    %43 = vector.shape_cast %42 : vector<32x32xf32> to vector<2x16x32xf32>
    %44 = vector.extract_strided_slice %41 {offsets = [0, 32], sizes = [32, 32], strides = [1, 1]} : vector<32x64xf32> to vector<32x32xf32>
    %45 = vector.shape_cast %44 : vector<32x32xf32> to vector<2x16x32xf32>
    %46 = vector.shape_cast %36 : vector<8x32xf32> to vector<1x8x32xf32>
    %47 = vector.shape_cast %46 : vector<1x8x32xf32> to vector<1x8x32xf32>
    %48 = vector.broadcast %47 : vector<1x8x32xf32> to vector<2x8x32xf32>
    "tpu.trace_start"() <{level = 10 : i32, message = "bqd,bkd->bqk"}> : () -> ()
    %cst_27 = arith.constant dense<0.000000e+00> : vector<2x8x16xf32>
    %49 = tpu.matmul %48, %43, %cst_27 {dimension_numbers = #tpu.dot_dimension_numbers<[2], [2], [1], [1], [0, 0, 0, 1, 1, 1], [0], [0]>} : vector<2x8x32xf32>, vector<2x16x32xf32>, vector<2x8x16xf32> -> vector<2x8x16xf32>
    "tpu.trace_stop"() : () -> ()
    %cst_28 = arith.constant 0.176776692 : f32
    %50 = vector.broadcast %cst_28 : f32 to vector<2x8x16xf32>
    %51 = arith.mulf %49, %50 : vector<2x8x16xf32>
    %cst_29 = arith.constant dense<0xFF800000> : vector<2x8xf32>
    %52 = vector.multi_reduction <maximumf>, %51, %cst_29 [2] : vector<2x8x16xf32> to vector<2x8xf32>
    %53 = vector.shape_cast %52 : vector<2x8xf32> to vector<2x8x1xf32>
    %54 = vector.broadcast %53 : vector<2x8x1xf32> to vector<2x8x16xf32>
    %55 = arith.subf %51, %54 : vector<2x8x16xf32>
    %56 = math.exp %55 : vector<2x8x16xf32>
    %cst_30 = arith.constant dense<0.000000e+00> : vector<2x8xf32>
    %57 = vector.multi_reduction <add>, %56, %cst_30 [2] : vector<2x8x16xf32> to vector<2x8xf32>
    %58 = vector.shape_cast %57 : vector<2x8xf32> to vector<2x8x1xf32>
    "tpu.trace_start"() <{level = 10 : i32, message = "bqk,bkd->bqd"}> : () -> ()
    %cst_31 = arith.constant dense<0.000000e+00> : vector<2x8x32xf32>
    %59 = tpu.matmul %56, %45, %cst_31 {dimension_numbers = #tpu.dot_dimension_numbers<[2], [1], [1], [2], [0, 0, 0, 1, 1, 2], [0], [0]>} : vector<2x8x16xf32>, vector<2x16x32xf32>, vector<2x8x32xf32> -> vector<2x8x32xf32>
    "tpu.trace_stop"() : () -> ()
    %60 = tpu.reciprocal %58 {approx = true} : vector<2x8x1xf32> -> vector<2x8x1xf32>
    %61 = vector.broadcast %60 : vector<2x8x1xf32> to vector<2x8x32xf32>
    %62 = arith.mulf %59, %61 : vector<2x8x32xf32>
    %63 = vector.shape_cast %62 : vector<2x8x32xf32> to vector<16x32xf32>
    %c0_32 = arith.constant 0 : index
    %c0_33 = arith.constant 0 : index
    %64 = vector.load %arg12[%c0_32, %c0_33] : memref<32x32xf32, #tpu.memory_space<vmem>>, vector<32x32xf32>
    %cst_34 = arith.constant dense<0.000000e+00> : vector<16x32xf32>
    %65 = tpu.matmul %63, %64, %cst_34 {dimension_numbers = #tpu.dot_dimension_numbers<[1], [0], [0], [1], [0, 0, 1, 1], [], []>} : vector<16x32xf32>, vector<32x32xf32>, vector<16x32xf32> -> vector<16x32xf32>
    %c0_35 = arith.constant 0 : index
    %c0_36 = arith.constant 0 : index
    %66 = vector.load %arg13[%c0_35, %c0_36] : memref<1x32xf32, #tpu.memory_space<vmem>>, vector<1x32xf32>
    %67 = vector.broadcast %66 : vector<1x32xf32> to vector<16x32xf32>
    %68 = arith.addf %65, %67 : vector<16x32xf32>
    %69 = vector.shape_cast %31 : vector<8x32xf32> to vector<1x8x32xf32>
    %70 = vector.shape_cast %69 : vector<1x8x32xf32> to vector<1x8x32xf32>
    %71 = vector.broadcast %70 : vector<1x8x32xf32> to vector<2x8x32xf32>
    %72 = vector.shape_cast %71 : vector<2x8x32xf32> to vector<16x32xf32>
    %73 = arith.addf %72, %68 : vector<16x32xf32>
    %c0_37 = arith.constant 0 : index
    %c0_38 = arith.constant 0 : index
    %74 = vector.load %arg14[%c0_37, %c0_38] : memref<1x32xf32, #tpu.memory_space<vmem>>, vector<1x32xf32>
    %c0_39 = arith.constant 0 : index
    %c0_40 = arith.constant 0 : index
    %75 = vector.load %arg15[%c0_39, %c0_40] : memref<1x32xf32, #tpu.memory_space<vmem>>, vector<1x32xf32>
    %cst_41 = arith.constant dense<0.000000e+00> : vector<16xf32>
    %76 = vector.multi_reduction <add>, %73, %cst_41 [1] : vector<16x32xf32> to vector<16xf32>
    %77 = vector.shape_cast %76 : vector<16xf32> to vector<16x1xf32>
    %cst_42 = arith.constant 3.200000e+01 : f32
    %78 = vector.broadcast %cst_42 : f32 to vector<16x1xf32>
    %79 = arith.divf %77, %78 : vector<16x1xf32>
    %80 = vector.broadcast %79 : vector<16x1xf32> to vector<16x32xf32>
    %81 = arith.subf %73, %80 : vector<16x32xf32>
    %82 = arith.mulf %81, %81 : vector<16x32xf32>
    %cst_43 = arith.constant dense<0.000000e+00> : vector<16xf32>
    %83 = vector.multi_reduction <add>, %82, %cst_43 [1] : vector<16x32xf32> to vector<16xf32>
    %84 = vector.shape_cast %83 : vector<16xf32> to vector<16x1xf32>
    %cst_44 = arith.constant 3.200000e+01 : f32
    %85 = vector.broadcast %cst_44 : f32 to vector<16x1xf32>
    %86 = arith.divf %84, %85 : vector<16x1xf32>
    %87 = vector.broadcast %79 : vector<16x1xf32> to vector<16x32xf32>
    %88 = arith.subf %73, %87 : vector<16x32xf32>
    %cst_45 = arith.constant 9.99999974E-6 : f32
    %89 = vector.broadcast %cst_45 : f32 to vector<16x1xf32>
    %90 = arith.addf %86, %89 : vector<16x1xf32>
    %91 = math.rsqrt %90 : vector<16x1xf32>
    %92 = vector.broadcast %91 : vector<16x1xf32> to vector<16x32xf32>
    %93 = arith.mulf %88, %92 : vector<16x32xf32>
    %94 = vector.broadcast %74 : vector<1x32xf32> to vector<16x32xf32>
    %95 = arith.mulf %93, %94 : vector<16x32xf32>
    %96 = vector.broadcast %75 : vector<1x32xf32> to vector<16x32xf32>
    %97 = arith.addf %95, %96 : vector<16x32xf32>
    %c0_46 = arith.constant 0 : index
    %c0_47 = arith.constant 0 : index
    %98 = vector.load %arg16[%c0_46, %c0_47] : memref<32x64xf32, #tpu.memory_space<vmem>>, vector<32x64xf32>
    %cst_48 = arith.constant dense<0.000000e+00> : vector<16x64xf32>
    %99 = tpu.matmul %97, %98, %cst_48 {dimension_numbers = #tpu.dot_dimension_numbers<[1], [0], [0], [1], [0, 0, 1, 1], [], []>} : vector<16x32xf32>, vector<32x64xf32>, vector<16x64xf32> -> vector<16x64xf32>
    %c0_49 = arith.constant 0 : index
    %c0_50 = arith.constant 0 : index
    %100 = vector.load %arg17[%c0_49, %c0_50] : memref<1x64xf32, #tpu.memory_space<vmem>>, vector<1x64xf32>
    %101 = vector.broadcast %100 : vector<1x64xf32> to vector<16x64xf32>
    %102 = arith.addf %99, %101 : vector<16x64xf32>
    %103 = arith.mulf %102, %102 : vector<16x64xf32>
    %104 = arith.mulf %102, %103 : vector<16x64xf32>
    %cst_51 = arith.constant 4.471500e-02 : f32
    %105 = vector.broadcast %cst_51 : f32 to vector<16x64xf32>
    %106 = arith.mulf %105, %104 : vector<16x64xf32>
    %107 = arith.addf %102, %106 : vector<16x64xf32>
    %cst_52 = arith.constant 0.797884583 : f32
    %108 = vector.broadcast %cst_52 : f32 to vector<16x64xf32>
    %109 = arith.mulf %108, %107 : vector<16x64xf32>
    %110 = math.tanh %109 : vector<16x64xf32>
    %cst_53 = arith.constant 1.000000e+00 : f32
    %111 = vector.broadcast %cst_53 : f32 to vector<16x64xf32>
    %112 = arith.addf %111, %110 : vector<16x64xf32>
    %cst_54 = arith.constant 5.000000e-01 : f32
    %113 = vector.broadcast %cst_54 : f32 to vector<16x64xf32>
    %114 = arith.mulf %113, %112 : vector<16x64xf32>
    %115 = arith.mulf %102, %114 : vector<16x64xf32>
    %c0_55 = arith.constant 0 : index
    %c0_56 = arith.constant 0 : index
    %116 = vector.load %arg18[%c0_55, %c0_56] : memref<64x32xf32, #tpu.memory_space<vmem>>, vector<64x32xf32>
    %cst_57 = arith.constant dense<0.000000e+00> : vector<16x32xf32>
    %117 = tpu.matmul %115, %116, %cst_57 {dimension_numbers = #tpu.dot_dimension_numbers<[1], [0], [0], [1], [0, 0, 1, 1], [], []>} : vector<16x64xf32>, vector<64x32xf32>, vector<16x32xf32> -> vector<16x32xf32>
    %c0_58 = arith.constant 0 : index
    %c0_59 = arith.constant 0 : index
    %118 = vector.load %arg19[%c0_58, %c0_59] : memref<1x32xf32, #tpu.memory_space<vmem>>, vector<1x32xf32>
    %119 = vector.broadcast %118 : vector<1x32xf32> to vector<16x32xf32>
    %120 = arith.addf %117, %119 : vector<16x32xf32>
    %121 = arith.addf %97, %120 : vector<16x32xf32>
    %c0_60 = arith.constant 0 : index
    %c0_61 = arith.constant 0 : index
    %122 = vector.load %arg20[%c0_60, %c0_61] : memref<1x32xf32, #tpu.memory_space<vmem>>, vector<1x32xf32>
    %c0_62 = arith.constant 0 : index
    %c0_63 = arith.constant 0 : index
    %123 = vector.load %arg21[%c0_62, %c0_63] : memref<1x32xf32, #tpu.memory_space<vmem>>, vector<1x32xf32>
    %cst_64 = arith.constant dense<0.000000e+00> : vector<16xf32>
    %124 = vector.multi_reduction <add>, %121, %cst_64 [1] : vector<16x32xf32> to vector<16xf32>
    %125 = vector.shape_cast %124 : vector<16xf32> to vector<16x1xf32>
    %cst_65 = arith.constant 3.200000e+01 : f32
    %126 = vector.broadcast %cst_65 : f32 to vector<16x1xf32>
    %127 = arith.divf %125, %126 : vector<16x1xf32>
    %128 = vector.broadcast %127 : vector<16x1xf32> to vector<16x32xf32>
    %129 = arith.subf %121, %128 : vector<16x32xf32>
    %130 = arith.mulf %129, %129 : vector<16x32xf32>
    %cst_66 = arith.constant dense<0.000000e+00> : vector<16xf32>
    %131 = vector.multi_reduction <add>, %130, %cst_66 [1] : vector<16x32xf32> to vector<16xf32>
    %132 = vector.shape_cast %131 : vector<16xf32> to vector<16x1xf32>
    %cst_67 = arith.constant 3.200000e+01 : f32
    %133 = vector.broadcast %cst_67 : f32 to vector<16x1xf32>
    %134 = arith.divf %132, %133 : vector<16x1xf32>
    %135 = vector.broadcast %127 : vector<16x1xf32> to vector<16x32xf32>
    %136 = arith.subf %121, %135 : vector<16x32xf32>
    %cst_68 = arith.constant 9.99999974E-6 : f32
    %137 = vector.broadcast %cst_68 : f32 to vector<16x1xf32>
    %138 = arith.addf %134, %137 : vector<16x1xf32>
    %139 = math.rsqrt %138 : vector<16x1xf32>
    %140 = vector.broadcast %139 : vector<16x1xf32> to vector<16x32xf32>
    %141 = arith.mulf %136, %140 : vector<16x32xf32>
    %142 = vector.broadcast %122 : vector<1x32xf32> to vector<16x32xf32>
    %143 = arith.mulf %141, %142 : vector<16x32xf32>
    %144 = vector.broadcast %123 : vector<1x32xf32> to vector<16x32xf32>
    %145 = arith.addf %143, %144 : vector<16x32xf32>
    %c0_69 = arith.constant 0 : index
    %c0_70 = arith.constant 0 : index
    %146 = vector.load %arg22[%c0_69, %c0_70] : memref<32x32xf32, #tpu.memory_space<vmem>>, vector<32x32xf32>
    %cst_71 = arith.constant dense<0.000000e+00> : vector<16x32xf32>
    %147 = tpu.matmul %145, %146, %cst_71 {dimension_numbers = #tpu.dot_dimension_numbers<[1], [0], [0], [1], [0, 0, 1, 1], [], []>} : vector<16x32xf32>, vector<32x32xf32>, vector<16x32xf32> -> vector<16x32xf32>
    %c0_72 = arith.constant 0 : index
    %c0_73 = arith.constant 0 : index
    %148 = vector.load %arg23[%c0_72, %c0_73] : memref<1x32xf32, #tpu.memory_space<vmem>>, vector<1x32xf32>
    %149 = vector.broadcast %148 : vector<1x32xf32> to vector<16x32xf32>
    %150 = arith.addf %147, %149 : vector<16x32xf32>
    %151 = vector.shape_cast %150 : vector<16x32xf32> to vector<2x8x32xf32>
    %c0_74 = arith.constant 0 : index
    %c0_75 = arith.constant 0 : index
    %c0_76 = arith.constant 0 : index
    %152 = vector.load %arg2[%c0_74, %c0_75, %c0_76] : memref<2x8x32xf32, #tpu.memory_space<vmem>>, vector<2x8x32xf32>
    %153 = tpu.concatenate %151, %152 in 1 : vector<2x8x32xf32>, vector<2x8x32xf32> -> vector<2x16x32xf32>
    %154 = vector.shape_cast %153 : vector<2x16x32xf32> to vector<32x32xf32>
    %c0_77 = arith.constant 0 : index
    %c0_78 = arith.constant 0 : index
    %155 = vector.load %arg24[%c0_77, %c0_78] : memref<32x96xf32, #tpu.memory_space<vmem>>, vector<32x96xf32>
    %cst_79 = arith.constant dense<0.000000e+00> : vector<32x96xf32>
    %156 = tpu.matmul %154, %155, %cst_79 {dimension_numbers = #tpu.dot_dimension_numbers<[1], [0], [0], [1], [0, 0, 1, 1], [], []>} : vector<32x32xf32>, vector<32x96xf32>, vector<32x96xf32> -> vector<32x96xf32>
    %c0_80 = arith.constant 0 : index
    %c0_81 = arith.constant 0 : index
    %157 = vector.load %arg25[%c0_80, %c0_81] : memref<1x96xf32, #tpu.memory_space<vmem>>, vector<1x96xf32>
    %158 = vector.broadcast %157 : vector<1x96xf32> to vector<32x96xf32>
    %159 = arith.addf %156, %158 : vector<32x96xf32>
    %160 = vector.extract_strided_slice %159 {offsets = [0, 0], sizes = [32, 32], strides = [1, 1]} : vector<32x96xf32> to vector<32x32xf32>
    %161 = vector.shape_cast %160 : vector<32x32xf32> to vector<2x16x32xf32>
    %162 = vector.extract_strided_slice %159 {offsets = [0, 32], sizes = [32, 32], strides = [1, 1]} : vector<32x96xf32> to vector<32x32xf32>
    %163 = vector.shape_cast %162 : vector<32x32xf32> to vector<2x16x32xf32>
    %164 = vector.extract_strided_slice %159 {offsets = [0, 64], sizes = [32, 32], strides = [1, 1]} : vector<32x96xf32> to vector<32x32xf32>
    %165 = vector.shape_cast %164 : vector<32x32xf32> to vector<2x16x32xf32>
    %166 = tpu.iota {dimensions = array<i32: 0>} : vector<16x16xi32>
    %167 = tpu.iota {dimensions = array<i32: 1>} : vector<16x16xi32>
    %c8_i32 = arith.constant 8 : i32
    %168 = vector.broadcast %c8_i32 : i32 to vector<16x16xi32>
    %169 = arith.cmpi slt, %167, %168 : vector<16x16xi32>
    %170 = arith.cmpi sle, %167, %166 : vector<16x16xi32>
    %171 = arith.ori %169, %170 : vector<16x16xi1>
    %cst_82 = arith.constant 0.000000e+00 : f32
    %cst_83 = arith.constant -1.000000e+09 : f32
    %172 = vector.broadcast %cst_82 : f32 to vector<16x16xf32>
    %173 = vector.broadcast %cst_83 : f32 to vector<16x16xf32>
    %174 = arith.select %171, %172, %173 : vector<16x16xi1>, vector<16x16xf32>
    %175 = vector.shape_cast %174 : vector<16x16xf32> to vector<1x16x16xf32>
    "tpu.trace_start"() <{level = 10 : i32, message = "bqd,bkd->bqk"}> : () -> ()
    %cst_84 = arith.constant dense<0.000000e+00> : vector<2x16x16xf32>
    %176 = tpu.matmul %161, %163, %cst_84 {dimension_numbers = #tpu.dot_dimension_numbers<[2], [2], [1], [1], [0, 0, 0, 1, 1, 1], [0], [0]>} : vector<2x16x32xf32>, vector<2x16x32xf32>, vector<2x16x16xf32> -> vector<2x16x16xf32>
    "tpu.trace_stop"() : () -> ()
    %cst_85 = arith.constant 0.176776692 : f32
    %177 = vector.broadcast %cst_85 : f32 to vector<2x16x16xf32>
    %178 = arith.mulf %176, %177 : vector<2x16x16xf32>
    %179 = vector.broadcast %175 : vector<1x16x16xf32> to vector<2x16x16xf32>
    %180 = arith.addf %178, %179 : vector<2x16x16xf32>
    %cst_86 = arith.constant dense<0xFF800000> : vector<2x16xf32>
    %181 = vector.multi_reduction <maximumf>, %180, %cst_86 [2] : vector<2x16x16xf32> to vector<2x16xf32>
    %182 = vector.shape_cast %181 : vector<2x16xf32> to vector<2x16x1xf32>
    %183 = vector.broadcast %182 : vector<2x16x1xf32> to vector<2x16x16xf32>
    %184 = arith.subf %180, %183 : vector<2x16x16xf32>
    %185 = math.exp %184 : vector<2x16x16xf32>
    %cst_87 = arith.constant dense<0.000000e+00> : vector<2x16xf32>
    %186 = vector.multi_reduction <add>, %185, %cst_87 [2] : vector<2x16x16xf32> to vector<2x16xf32>
    %187 = vector.shape_cast %186 : vector<2x16xf32> to vector<2x16x1xf32>
    "tpu.trace_start"() <{level = 10 : i32, message = "bqk,bkd->bqd"}> : () -> ()
    %cst_88 = arith.constant dense<0.000000e+00> : vector<2x16x32xf32>
    %188 = tpu.matmul %185, %165, %cst_88 {dimension_numbers = #tpu.dot_dimension_numbers<[2], [1], [1], [2], [0, 0, 0, 1, 1, 2], [0], [0]>} : vector<2x16x16xf32>, vector<2x16x32xf32>, vector<2x16x32xf32> -> vector<2x16x32xf32>
    "tpu.trace_stop"() : () -> ()
    %189 = tpu.reciprocal %187 {approx = true} : vector<2x16x1xf32> -> vector<2x16x1xf32>
    %190 = vector.broadcast %189 : vector<2x16x1xf32> to vector<2x16x32xf32>
    %191 = arith.mulf %188, %190 : vector<2x16x32xf32>
    %192 = vector.shape_cast %191 : vector<2x16x32xf32> to vector<32x32xf32>
    %c0_89 = arith.constant 0 : index
    %c0_90 = arith.constant 0 : index
    %193 = vector.load %arg26[%c0_89, %c0_90] : memref<32x32xf32, #tpu.memory_space<vmem>>, vector<32x32xf32>
    %cst_91 = arith.constant dense<0.000000e+00> : vector<32x32xf32>
    %194 = tpu.matmul %192, %193, %cst_91 {dimension_numbers = #tpu.dot_dimension_numbers<[1], [0], [0], [1], [0, 0, 1, 1], [], []>} : vector<32x32xf32>, vector<32x32xf32>, vector<32x32xf32> -> vector<32x32xf32>
    %c0_92 = arith.constant 0 : index
    %c0_93 = arith.constant 0 : index
    %195 = vector.load %arg27[%c0_92, %c0_93] : memref<1x32xf32, #tpu.memory_space<vmem>>, vector<1x32xf32>
    %196 = vector.broadcast %195 : vector<1x32xf32> to vector<32x32xf32>
    %197 = arith.addf %194, %196 : vector<32x32xf32>
    %198 = arith.addf %154, %197 : vector<32x32xf32>
    %c0_94 = arith.constant 0 : index
    %c0_95 = arith.constant 0 : index
    %199 = vector.load %arg28[%c0_94, %c0_95] : memref<1x32xf32, #tpu.memory_space<vmem>>, vector<1x32xf32>
    %c0_96 = arith.constant 0 : index
    %c0_97 = arith.constant 0 : index
    %200 = vector.load %arg29[%c0_96, %c0_97] : memref<1x32xf32, #tpu.memory_space<vmem>>, vector<1x32xf32>
    %cst_98 = arith.constant dense<0.000000e+00> : vector<32xf32>
    %201 = vector.multi_reduction <add>, %198, %cst_98 [1] : vector<32x32xf32> to vector<32xf32>
    %202 = vector.shape_cast %201 : vector<32xf32> to vector<32x1xf32>
    %cst_99 = arith.constant 3.200000e+01 : f32
    %203 = vector.broadcast %cst_99 : f32 to vector<32x1xf32>
    %204 = arith.divf %202, %203 : vector<32x1xf32>
    %205 = vector.broadcast %204 : vector<32x1xf32> to vector<32x32xf32>
    %206 = arith.subf %198, %205 : vector<32x32xf32>
    %207 = arith.mulf %206, %206 : vector<32x32xf32>
    %cst_100 = arith.constant dense<0.000000e+00> : vector<32xf32>
    %208 = vector.multi_reduction <add>, %207, %cst_100 [1] : vector<32x32xf32> to vector<32xf32>
    %209 = vector.shape_cast %208 : vector<32xf32> to vector<32x1xf32>
    %cst_101 = arith.constant 3.200000e+01 : f32
    %210 = vector.broadcast %cst_101 : f32 to vector<32x1xf32>
    %211 = arith.divf %209, %210 : vector<32x1xf32>
    %212 = vector.broadcast %204 : vector<32x1xf32> to vector<32x32xf32>
    %213 = arith.subf %198, %212 : vector<32x32xf32>
    %cst_102 = arith.constant 9.99999974E-6 : f32
    %214 = vector.broadcast %cst_102 : f32 to vector<32x1xf32>
    %215 = arith.addf %211, %214 : vector<32x1xf32>
    %216 = math.rsqrt %215 : vector<32x1xf32>
    %217 = vector.broadcast %216 : vector<32x1xf32> to vector<32x32xf32>
    %218 = arith.mulf %213, %217 : vector<32x32xf32>
    %219 = vector.broadcast %199 : vector<1x32xf32> to vector<32x32xf32>
    %220 = arith.mulf %218, %219 : vector<32x32xf32>
    %221 = vector.broadcast %200 : vector<1x32xf32> to vector<32x32xf32>
    %222 = arith.addf %220, %221 : vector<32x32xf32>
    %223 = vector.shape_cast %222 : vector<32x32xf32> to vector<2x16x32xf32>
    %224 = vector.extract_strided_slice %223 {offsets = [0, 15, 0], sizes = [2, 1, 32], strides = [1, 1, 1]} : vector<2x16x32xf32> to vector<2x1x32xf32>
    %225 = vector.shape_cast %224 : vector<2x1x32xf32> to vector<2x32xf32>
    %c0_103 = arith.constant 0 : index
    %c0_104 = arith.constant 0 : index
    %226 = vector.load %arg30[%c0_103, %c0_104] : memref<32x64xf32, #tpu.memory_space<vmem>>, vector<32x64xf32>
    %cst_105 = arith.constant dense<0.000000e+00> : vector<2x64xf32>
    %227 = tpu.matmul %225, %226, %cst_105 {dimension_numbers = #tpu.dot_dimension_numbers<[1], [0], [0], [1], [0, 0, 1, 1], [], []>} : vector<2x32xf32>, vector<32x64xf32>, vector<2x64xf32> -> vector<2x64xf32>
    %c0_106 = arith.constant 0 : index
    %c0_107 = arith.constant 0 : index
    %228 = vector.load %arg31[%c0_106, %c0_107] : memref<1x64xf32, #tpu.memory_space<vmem>>, vector<1x64xf32>
    %229 = vector.broadcast %228 : vector<1x64xf32> to vector<2x64xf32>
    %230 = arith.addf %227, %229 : vector<2x64xf32>
    %c0_108 = arith.constant 0 : index
    %c0_109 = arith.constant 0 : index
    %231 = vector.load %arg32[%c0_108, %c0_109] : memref<2x64xf32, #tpu.memory_space<vmem>>, vector<2x64xf32>
    tpu.vector_store %arg32[%c0_108, %c0_109], %230 {strides = array<i32>} : memref<2x64xf32, #tpu.memory_space<vmem>>, vector<2x64xf32>,
    %232 = tpu.iota {dimensions = array<i32: 1>} : vector<2x64xi32>
    %cst_110 = arith.constant dense<0xFF800000> : vector<2xf32>
    %233 = vector.multi_reduction <maximumf>, %230, %cst_110 [1] : vector<2x64xf32> to vector<2xf32>
    %234 = vector.shape_cast %233 : vector<2xf32> to vector<2x1xf32>
    %235 = vector.broadcast %234 : vector<2x1xf32> to vector<2x64xf32>
    %236 = arith.cmpf oeq, %230, %235 : vector<2x64xf32>
    %c64_i32 = arith.constant 64 : i32
    %237 = vector.broadcast %c64_i32 : i32 to vector<2x64xi32>
    %238 = arith.select %236, %232, %237 : vector<2x64xi1>, vector<2x64xi32>
    %cst_111 = arith.constant dense<2147483647> : vector<2xi32>
    %239 = vector.multi_reduction <minsi>, %238, %cst_111 [1] : vector<2x64xi32> to vector<2xi32>
    %240 = vector.shape_cast %239 : vector<2xi32> to vector<2x1xi32>
    %c0_112 = arith.constant 0 : index
    %c0_113 = arith.constant 0 : index
    %241 = vector.load %arg33[%c0_112, %c0_113] : memref<2x1xi32, #tpu.memory_space<vmem>>, vector<2x1xi32>
    tpu.vector_store %arg33[%c0_112, %c0_113], %240 {strides = array<i32>} : memref<2x1xi32, #tpu.memory_space<vmem>>, vector<2x1xi32>,
    return
  }
  func.func @transform_0(%arg0: i32) -> (i32, i32, i32) {
    %c0_i32 = arith.constant 0 : i32
    %c0_i32_0 = arith.constant 0 : i32
    %c0_i32_1 = arith.constant 0 : i32
    %c0_i32_2 = arith.constant 0 : i32
    return %c0_i32, %c0_i32_0, %c0_i32_1 : i32, i32, i32
  }
  func.func @transform_1(%arg0: i32) -> (i32, i32, i32) {
    %c0_i32 = arith.constant 0 : i32
    %c0_i32_0 = arith.constant 0 : i32
    %c0_i32_1 = arith.constant 0 : i32
    %c0_i32_2 = arith.constant 0 : i32
    return %c0_i32, %c0_i32_0, %c0_i32_1 : i32, i32, i32
  }
  func.func @transform_2(%arg0: i32) -> (i32, i32) {
    %c0_i32 = arith.constant 0 : i32
    %c0_i32_0 = arith.constant 0 : i32
    %c0_i32_1 = arith.constant 0 : i32
    return %c0_i32, %c0_i32_0 : i32, i32
  }
  func.func @transform_3(%arg0: i32) -> (i32, i32) {
    %c0_i32 = arith.constant 0 : i32
    %c0_i32_0 = arith.constant 0 : i32
    %c0_i32_1 = arith.constant 0 : i32
    return %c0_i32, %c0_i32_0 : i32, i32
  }
  func.func @transform_4(%arg0: i32) -> (i32, i32) {
    %c0_i32 = arith.constant 0 : i32
    %c0_i32_0 = arith.constant 0 : i32
    %c0_i32_1 = arith.constant 0 : i32
    return %c0_i32, %c0_i32_0 : i32, i32
  }
  func.func @transform_5(%arg0: i32) -> (i32, i32) {
    %c0_i32 = arith.constant 0 : i32
    %c0_i32_0 = arith.constant 0 : i32
    %c0_i32_1 = arith.constant 0 : i32
    return %c0_i32, %c0_i32_0 : i32, i32
  }
  func.func @transform_6(%arg0: i32) -> (i32, i32) {
    %c0_i32 = arith.constant 0 : i32
    %c0_i32_0 = arith.constant 0 : i32
    %c0_i32_1 = arith.constant 0 : i32
    return %c0_i32, %c0_i32_0 : i32, i32
  }
  func.func @transform_7(%arg0: i32) -> (i32, i32) {
    %c0_i32 = arith.constant 0 : i32
    %c0_i32_0 = arith.constant 0 : i32
    %c0_i32_1 = arith.constant 0 : i32
    return %c0_i32, %c0_i32_0 : i32, i32
  }
  func.func @transform_8(%arg0: i32) -> (i32, i32) {
    %c0_i32 = arith.constant 0 : i32
    %c0_i32_0 = arith.constant 0 : i32
    %c0_i32_1 = arith.constant 0 : i32
    return %c0_i32, %c0_i32_0 : i32, i32
  }
  func.func @transform_9(%arg0: i32) -> (i32, i32) {
    %c0_i32 = arith.constant 0 : i32
    %c0_i32_0 = arith.constant 0 : i32
    %c0_i32_1 = arith.constant 0 : i32
    return %c0_i32, %c0_i32_0 : i32, i32
  }
  func.func @transform_10(%arg0: i32) -> (i32, i32) {
    %c0_i32 = arith.constant 0 : i32
    %c0_i32_0 = arith.constant 0 : i32
    %c0_i32_1 = arith.constant 0 : i32
    return %c0_i32, %c0_i32_0 : i32, i32
  }
  func.func @transform_11(%arg0: i32) -> (i32, i32) {
    %c0_i32 = arith.constant 0 : i32
    %c0_i32_0 = arith.constant 0 : i32
    %c0_i32_1 = arith.constant 0 : i32
    return %c0_i32, %c0_i32_0 : i32, i32
  }
  func.func @transform_12(%arg0: i32) -> (i32, i32) {
    %c0_i32 = arith.constant 0 : i32
    %c0_i32_0 = arith.constant 0 : i32
    %c0_i32_1 = arith.constant 0 : i32
    return %c0_i32, %c0_i32_0 : i32, i32
  }
  func.func @transform_13(%arg0: i32) -> (i32, i32) {
    %c0_i32 = arith.constant 0 : i32
    %c0_i32_0 = arith.constant 0 : i32
    %c0_i32_1 = arith.constant 0 : i32
    return %c0_i32, %c0_i32_0 : i32, i32
  }
  func.func @transform_14(%arg0: i32) -> (i32, i32) {
    %c0_i32 = arith.constant 0 : i32
    %c0_i32_0 = arith.constant 0 : i32
    %c0_i32_1 = arith.constant 0 : i32
    return %c0_i32, %c0_i32_0 : i32, i32
  }
  func.func @transform_15(%arg0: i32) -> (i32, i32) {
    %c0_i32 = arith.constant 0 : i32
    %c0_i32_0 = arith.constant 0 : i32
    %c0_i32_1 = arith.constant 0 : i32
    return %c0_i32, %c0_i32_0 : i32, i32
  }
  func.func @transform_16(%arg0: i32) -> (i32, i32) {
    %c0_i32 = arith.constant 0 : i32
    %c0_i32_0 = arith.constant 0 : i32
    %c0_i32_1 = arith.constant 0 : i32
    return %c0_i32, %c0_i32_0 : i32, i32
  }
  func.func @transform_17(%arg0: i32) -> (i32, i32) {
    %c0_i32 = arith.constant 0 : i32
    %c0_i32_0 = arith.constant 0 : i32
    %c0_i32_1 = arith.constant 0 : i32
    return %c0_i32, %c0_i32_0 : i32, i32
  }
  func.func @transform_18(%arg0: i32) -> (i32, i32) {
    %c0_i32 = arith.constant 0 : i32
    %c0_i32_0 = arith.constant 0 : i32
    %c0_i32_1 = arith.constant 0 : i32
    return %c0_i32, %c0_i32_0 : i32, i32
  }
  func.func @transform_19(%arg0: i32) -> (i32, i32) {
    %c0_i32 = arith.constant 0 : i32
    %c0_i32_0 = arith.constant 0 : i32
    %c0_i32_1 = arith.constant 0 : i32
    return %c0_i32, %c0_i32_0 : i32, i32
  }
  func.func @transform_20(%arg0: i32) -> (i32, i32) {
    %c0_i32 = arith.constant 0 : i32
    %c0_i32_0 = arith.constant 0 : i32
    %c0_i32_1 = arith.constant 0 : i32
    return %c0_i32, %c0_i32_0 : i32, i32
  }
  func.func @transform_21(%arg0: i32) -> (i32, i32) {
    %c0_i32 = arith.constant 0 : i32
    %c0_i32_0 = arith.constant 0 : i32
    %c0_i32_1 = arith.constant 0 : i32
    return %c0_i32, %c0_i32_0 : i32, i32
  }
  func.func @transform_22(%arg0: i32) -> (i32, i32) {
    %c0_i32 = arith.constant 0 : i32
    %c0_i32_0 = arith.constant 0 : i32
    %c0_i32_1 = arith.constant 0 : i32
    return %c0_i32, %c0_i32_0 : i32, i32
  }
  func.func @transform_23(%arg0: i32) -> (i32, i32) {
    %c0_i32 = arith.constant 0 : i32
    %c0_i32_0 = arith.constant 0 : i32
    %c0_i32_1 = arith.constant 0 : i32
    return %c0_i32, %c0_i32_0 : i32, i32
  }
  func.func @transform_24(%arg0: i32) -> (i32, i32) {
    %c0_i32 = arith.constant 0 : i32
    %c0_i32_0 = arith.constant 0 : i32
    %c0_i32_1 = arith.constant 0 : i32
    return %c0_i32, %c0_i32_0 : i32, i32
  }
  func.func @transform_25(%arg0: i32) -> (i32, i32) {
    %c0_i32 = arith.constant 0 : i32
    %c0_i32_0 = arith.constant 0 : i32
    %c0_i32_1 = arith.constant 0 : i32
    return %c0_i32, %c0_i32_0 : i32, i32
  }
  func.func @transform_26(%arg0: i32) -> (i32, i32) {
    %c0_i32 = arith.constant 0 : i32
    %c0_i32_0 = arith.constant 0 : i32
    %c0_i32_1 = arith.constant 0 : i32
    return %c0_i32, %c0_i32_0 : i32, i32
  }
  func.func @transform_27(%arg0: i32) -> (i32, i32) {
    %c0_i32 = arith.constant 0 : i32
    %c0_i32_0 = arith.constant 0 : i32
    %c0_i32_1 = arith.constant 0 : i32
    return %c0_i32, %c0_i32_0 : i32, i32
  }
  func.func @transform_28(%arg0: i32) -> (i32, i32) {
    %c0_i32 = arith.constant 0 : i32
    %c0_i32_0 = arith.constant 0 : i32
    %c0_i32_1 = arith.constant 0 : i32
    return %c0_i32, %c0_i32_0 : i32, i32
  }
  func.func @transform_29(%arg0: i32) -> (i32, i32) {
    %c0_i32 = arith.constant 0 : i32
    %c0_i32_0 = arith.constant 0 : i32
    %c0_i32_1 = arith.constant 0 : i32
    return %c0_i32, %c0_i32_0 : i32, i32
  }
  func.func @transform_30(%arg0: i32) -> (i32, i32) {
    %c0_i32 = arith.constant 0 : i32
    %c0_i32_0 = arith.constant 0 : i32
    %c0_i32_1 = arith.constant 0 : i32
    return %c0_i32, %c0_i32_0 : i32, i32
  }
  func.func @transform_31(%arg0: i32) -> (i32, i32) {
    %c0_i32 = arith.constant 0 : i32
    %c0_i32_0 = arith.constant 0 : i32
    %c0_i32_1 = arith.constant 0 : i32
    return %c0_i32, %c0_i32_0 : i32, i32
  }
  func.func @transform_32(%arg0: i32) -> (i32, i32) {
    %c0_i32 = arith.constant 0 : i32
    %c0_i32_0 = arith.constant 0 : i32
    %c0_i32_1 = arith.constant 0 : i32
    return %c0_i32, %c0_i32_0 : i32, i32
  }
}

</mosaic_0001>

<bundles_post_ra>
// kernel: _forward.1
= control target key start
LH: loop header
LB: loop body
LE: loop exit
PB: predicated region body
PF: predicated region fallthrough
CT: control target
= control target key end

     0   :  { %s2649_s6 = smov 1   ;;  %s2650_s10 = smov 2   ;;  %s3093_s0 = inlined_call_operand.smem [shape: u32[33], index: -1, kind: input, shape index: {}] }
   0x1   :  { %s2695_s5 = sld [smem:[%s3093_s0]]   ;;  %s2651_s14 = smov 3  }
   0x2   :  { %s2700_s9 = sld [smem:[%s3093_s0 + %s2649_s6]]   ;;  %s2652_s18 = smov 4  }
   0x3   :  { %s2705_s13 = sld [smem:[%s3093_s0 + %s2650_s10]]   ;;  %s2653_s22 = smov 5  }
   0x4   :  { %s2710_s17 = sld [smem:[%s3093_s0 + %s2651_s14]]   ;;  %s2654_s26 = smov 6  }
   0x5   :  { %s2715_s21 = sld [smem:[%s3093_s0 + %s2652_s18]]   ;;  %s2655_s30 = smov 7  }
   0x6   :  { %s2720_s25 = sld [smem:[%s3093_s0 + %s2653_s22]]   ;;  %s2656_s4 = smov 8  }
   0x7   :  { %s2725_s29 = sld [smem:[%s3093_s0 + %s2654_s26]]   ;;  %s2657_s10 = smov 9  }
   0x8   :  { %3099 = sst [smem:[#allocation5_spill]] %s2700_s9  ;;  %s2658_s15 = smov 10  }
   0x9   :  { %s2730_s3 = sld [smem:[%s3093_s0 + %s2655_s30]]   ;;  %s2659_s20 = smov 11  }
   0xa   :  { %s2735_s8 = sld [smem:[%s3093_s0 + %s2656_s4]]   ;;  %s2660_s26 = smov 12  }
   0xb   :  { %s2740_s14 = sld [smem:[%s3093_s0 + %s2657_s10]]   ;;  %s2661_s1 = smov 13  }
   0xc   :  { %s2745_s19 = sld [smem:[%s3093_s0 + %s2658_s15]]   ;;  %s2662_s7 = smov 14  }
   0xd   :  { %s2750_s24 = sld [smem:[%s3093_s0 + %s2659_s20]]   ;;  %s2663_s15 = smov 15  }
   0xe   :  { %s2755_s30 = sld [smem:[%s3093_s0 + %s2660_s26]]   ;;  %s2664_s22 = smov 16  }
   0xf   :  { %s2760_s6 = sld [smem:[%s3093_s0 + %s2661_s1]]   ;;  %s2665_s28 = smov 17  }
  0x10   :  { %s2765_s12 = sld [smem:[%s3093_s0 + %s2662_s7]]   ;;  %s2666_s7 = smov 18  }
  0x11   :  { %s2770_s20 = sld [smem:[%s3093_s0 + %s2663_s15]]   ;;  %s2667_s15 = smov 19  }
  0x12   :  { %s2775_s27 = sld [smem:[%s3093_s0 + %s2664_s22]]   ;;  %s2668_s22 = smov 20  }
  0x13   :  { %s2780_s4 = sld [smem:[%s3093_s0 + %s2665_s28]]   ;;  %s2669_s28 = smov 21  }
  0x14   :  { %s2785_s9 = sld [smem:[%s3093_s0 + %s2666_s7]]   ;;  %s2670_s7 = smov 22  }
  0x16   :  { %3100 = sst [smem:[#allocation6_spill]] %s2765_s12 }
  0x17   :  { %s2790_s12 = sld [smem:[%s3093_s0 + %s2667_s15]]   ;;  %s2671_s15 = smov 23  }
  0x18   :  { %3101 = sst [smem:[#allocation7_spill]] %s2775_s27 }
  0x19   :  { %3102 = sst [smem:[#allocation8_spill]] %s2780_s4 }
  0x1a   :  { %3103 = sst [smem:[#allocation9_spill]] %s2785_s9 }
  0x1b   :  { %s2795_s27 = sld [smem:[%s3093_s0 + %s2668_s22]]   ;;  %s2672_s22 = smov 24  }
  0x1c   :  { %s2800_s4 = sld [smem:[%s3093_s0 + %s2669_s28]]   ;;  %s2673_s28 = smov 25  }
  0x1d   :  { %3104 = sst [smem:[#allocation10_spill]] %s2790_s12 }
  0x1e   :  { %s2805_s9 = sld [smem:[%s3093_s0 + %s2670_s7]]   ;;  %s2674_s7 = smov 26  }
  0x1f   :  { %s2810_s12 = sld [smem:[%s3093_s0 + %s2671_s15]]   ;;  %s2675_s15 = smov 27  }
  0x21   :  { %3105 = sst [smem:[#allocation11_spill]] %s2795_s27 }
  0x22   :  { %3106 = sst [smem:[#allocation12_spill]] %s2800_s4 }
  0x23   :  { %s2815_s27 = sld [smem:[%s3093_s0 + %s2672_s22]]   ;;  %s2676_s22 = smov 28  }
  0x24   :  { %3107 = sst [smem:[#allocation13_spill]] %s2805_s9 }
  0x25   :  { %3108 = sst [smem:[#allocation14_spill]] %s2810_s12 }
  0x26   :  { %s2820_s4 = sld [smem:[%s3093_s0 + %s2673_s28]]   ;;  %s2677_s28 = smov 29  }
  0x27   :  { %s2825_s9 = sld [smem:[%s3093_s0 + %s2674_s7]]   ;;  %s2678_s7 = smov 30  }
  0x28   :  { %s2830_s12 = sld [smem:[%s3093_s0 + %s2675_s15]]   ;;  %s2679_s15 = smov 31  }
  0x29   :  { %3109 = sst [smem:[#allocation15_spill]] %s2815_s27 }
  0x2a   :  { %s2835_s27 = sld [smem:[%s3093_s0 + %s2676_s22]]   ;;  %s2680_s22 = smov 32  }
  0x2c   :  { %3110 = sst [smem:[#allocation16_spill]] %s2820_s4 }
  0x2d   :  { %3111 = sst [smem:[#allocation17_spill]] %s2825_s9 }
  0x2e   :  { %3112 = sst [smem:[#allocation18_spill]] %s2830_s12 }
  0x2f   :  { %s2840_s4 = sld [smem:[%s3093_s0 + %s2677_s28]]  }
  0x30   :  { %3113 = sst [smem:[#allocation19_spill]] %s2835_s27 }
  0x31   :  { %s2845_s9 = sld [smem:[%s3093_s0 + %s2678_s7]]  }
  0x32   :  { %s2850_s12 = sld [smem:[%s3093_s0 + %s2679_s15]]  }
  0x33   :  { %s2855_s27 = sld [smem:[%s3093_s0 + %s2680_s22]]  }
  0x34   :  { %v145_v0 = vld [vmem:[%s2705_s13 + $0x38] sm:$0xff]  ;;  %v144_v1 = vld [vmem:[%s2705_s13 + $0x30] sm:$0xff]  ;;  %vm153_vm0 = vcmask 523264   ;;  %v143_v2 = vld [vmem:[%s2705_s13 + $0x28] sm:$0xff] }
  0x35   :  { %2347 = vmatprep.subr.mxu0 %v145_v0  ;;  %v134_v3 = vld [vmem:[%s2695_s5] sm:$0xff] }
  0x36   :  { %2348 = vmatpush3.msra.mxu0 %v145_v0  ;;  %2363 = vmatprep.mubr.msk.f32.mxu0 %vm153_vm0, %v134_v3  ;;  %v142_v4 = vld [vmem:[%s2705_s13 + $0x20] sm:$0xff] }
  0x37   :  { %2349 = vmatprep.subr.mxu0 %v144_v1 }
  0x38   :  { %2350 = vmatpush3.msra.mxu0 %v144_v1 }
  0x39   :  { %71 = vsyncpa [#allocation3], 0  ;;  %2351 = vmatprep.subr.mxu0 %v143_v2  ;;  %v141_v5 = vld [vmem:[%s2705_s13 + $0x18] sm:$0xff]  ;;  %v140_v6 = vld [vmem:[%s2705_s13 + $0x10] sm:$0xff]  ;;  %vm253_vm1 = vcmask 261120   ;;  %v2681_v45 = vmov 0.0  }
  0x3a   :  { %2352 = vmatpush3.msra.mxu0 %v143_v2  ;;  %v139_v7 = vld [vmem:[%s2705_s13 + $0x8] sm:$0xff]  ;;  %v138_v8 = vld [vmem:[%s2705_s13] sm:$0xff]  ;;  %v136_v10 = vld [vmem:[%s2695_s5 + $0x10] sm:$0xff]  ;;  %2369 = vmatprep.subr.mxu1 %v2681_v45  ;;  %vm2682_vm2 = vmmov 0   ;;  %s2683_s0 = smov 96   ;;  %vm677_vm3 = vcmask 130048  }
  0x3b   :  { %2353 = vmatprep.subr.mxu0 %v142_v4  ;;  %v135_v9 = vld [vmem:[%s2695_s5 + $0x8] sm:$0xff]  ;;  %v137_v11 = vld [vmem:[%s2695_s5 + $0x18] sm:$0xff]  ;;  %v2181_v13 = vld [vmem:[%s2710_s17] ss:$0 sm:$0xff]  ;;  %2377 = vmatprep.mubr.msk.f32.mxu1 %vm2682_vm2, %v2681_v45  ;;  %s3114_s5 = sld [smem:[#allocation6_spill]]  ;;  %vm2033_vm9 = vcmask 1041409  }
  0x3c   :  { %2354 = vmatpush3.msra.mxu0 %v142_v4  ;;  %v331_v46 = vld [vmem:[%s2730_s3 + $0x18] sm:$0xff]  ;;  %v330_v47 = vld [vmem:[%s2730_s3 + $0x10] sm:$0xff]  ;;  %v329_v48 = vld [vmem:[%s2730_s3 + $0x8] sm:$0xff]  ;;  %s3115_s13 = sld [smem:[#allocation8_spill]]  ;;  %vm2107_vm10 = vcmask 517120  }
  0x3d   :  { %2355 = vmatprep.subr.mxu0 %v141_v5  ;;  %2370 = vmatpush3.msra.mxu1 %v331_v46  ;;  %v328_v49 = vld [vmem:[%s2730_s3] sm:$0xff]  ;;  %v415_v51 = vld [vmem:[%s2740_s14 + $0x18] sm:$0xff]  ;;  %v414_v52 = vld [vmem:[%s2740_s14 + $0x10] sm:$0xff]  ;;  %s3116_s17 = sld [smem:[#allocation7_spill]] }
  0x3e   :  { %2356 = vmatpush3.msra.mxu0 %v141_v5  ;;  %2371 = vmatprep.subr.mxu1 %v2681_v45  ;;  %v2910_v50 = vld [vmem:[%s2725_s29] sm:$0xff]  ;;  %v413_v53 = vld [vmem:[%s2740_s14 + $0x8] sm:$0xff]  ;;  %s3119_s29 = sld [smem:[#allocation14_spill]] }
  0x3f   :  { %2357 = vmatprep.subr.mxu0 %v140_v6  ;;  %2372 = vmatpush3.msra.mxu1 %v330_v47  ;;  %v412_v54 = vld [vmem:[%s2740_s14] sm:$0xff]  ;;  %s3120_s3 = sld [smem:[#allocation10_spill]] }
  0x40   :  { %2358 = vmatpush3.msra.mxu0 %v140_v6  ;;  %2373 = vmatprep.subr.mxu1 %v2681_v45  ;;  %v2186_v4 = vld [vmem:[%s2715_s21] ss:$0 sm:$0xff]  ;;  %s3117_s21 = sld [smem:[#allocation9_spill]] }
  0x41   :  { %2359 = vmatprep.subr.mxu0 %v139_v7  ;;  %2374 = vmatpush3.msra.mxu1 %v329_v48  ;;  %v2187_v6 = vld [vmem:[%s2720_s25] ss:$0 sm:$0xff]  ;;  %s3118_s25 = sld [smem:[#allocation12_spill]] }
  0x42   :  { %2360 = vmatpush3.msra.mxu0 %v139_v7  ;;  %2375 = vmatprep.subr.mxu1 %v2681_v45  ;;  %s3122_s14 = sld [smem:[#allocation13_spill]] }
  0x43   :  { %2361 = vmatprep.subr.mxu0 %v138_v8  ;;  %2376 = vmatpush3.msra.mxu1 %v328_v49  ;;  %s3127_s28 = sld [smem:[#allocation18_spill]] }
  0x44   :  { %2362 = vmatpush3.msra.mxu0 %v138_v8  ;;  %2378 = vmatmul.mubr.msk.f32.vlgmr.msra.gmra.mxu1 %vm253_vm1, %v2910_v50  ;;  %s3128_s1 = sld [smem:[#allocation19_spill]] }
  0x45   :  { %2364 = vmatmul.mubr.msk.f32.vlgmr.msra.gmra.mxu0 %vm153_vm0, %v135_v9  ;;  %2394 = vmatprep.subr.mxu0 %v2681_v45 }
  0x46   :  { %2366 = vmatprep.mubr.msk.f32.mxu0 %vm153_vm0, %v136_v10  ;;  %2380 = vmatprep.subr.mxu1 %v415_v51 }
  0x47   :  { %2381 = vmatpush3.msra.mxu1 %v415_v51 }
  0x48   :  { %2382 = vmatprep.subr.mxu1 %v414_v52 }
  0x49   :  { %2367 = vmatmul.mubr.msk.f32.gmra.mxu0 %vm153_vm0, %v137_v11  ;;  %2383 = vmatpush3.msra.mxu1 %v414_v52 }
  0x4a   :  { %2398 = vmatprep.mubr.msk.f32.mxu0 %vm2682_vm2, %v2681_v45  ;;  %2384 = vmatprep.subr.mxu1 %v413_v53 }
  0x4b   :  { %2385 = vmatpush3.msra.mxu1 %v413_v53 }
  0x4c   :  { %2386 = vmatprep.subr.mxu1 %v412_v54 }
  0x4d   :  { %2387 = vmatpush3.msra.mxu1 %v412_v54 }
  0x4e   :  { %2401 = vmatprep.subr.mxu1 %v2681_v45 }
 0x105   :  { %v2365_v12 = vpop.f32.mrf.mxu0 }
 0x106   :  { %v238_v17 = vadd.f32 %v2365_v12, %v2181_v13 }
 0x107   :  { %v232_v14 = vpop.f32.mrf.mxu0 }
 0x108   :  { %v233_v15 = vadd.f32 %v2181_v13, %v232_v14  ;;  %v257_v23 = vsel %vm253_vm1, %v238_v17, 0.0 }
 0x109   :  { %v2368_v16 = vpop.f32.mrf.mxu0 }
 0x10a   :  { %v254_v18 = vsel %vm253_vm1, %v233_v15, 0.0  ;;  %v248_v21 = vadd.f32 %v2368_v16, %v2181_v13 }
 0x10b   :  { %v242_v19 = vpop.f32.mrf.mxu0  ;;  %255 = vadd.xlane.f32.xlu0 %v254_v18 }
 0x10c   :  { %v243_v20 = vadd.f32 %v2181_v13, %v242_v19  ;;  %v263_v24 = vsel %vm253_vm1, %v248_v21, 0.0 }
 0x10e   :  { %v260_v22 = vsel %vm253_vm1, %v243_v20, 0.0 }
 0x10f   :  { %261 = vadd.xlane.f32.xlu1 %v260_v22  ;;  %258 = vadd.xlane.f32.xlu0 %v257_v23  ;;  %v2190_v23 = vld [vmem:[%s2745_s19] ss:$0 sm:$0xff]  ;;  %s3123_s19 = sld [smem:[#allocation5_spill]] }
 0x113   :  { %264 = vadd.xlane.f32.xlu1 %v263_v24 }
 0x194   :  { %v256_v25 = vpop.xlane.xlu0 %255 }
 0x195   :  { %v267_v26 = vmul.f32 0.03125, %v256_v25 }
 0x197   :  { %v2878_v27 = vsub.f32 %v233_v15, %v267_v26 }
 0x198   :  { %v262_v28 = vpop.xlane.xlu1 %261  ;;  %v259_v29 = vpop.xlane.xlu0 %258 }
 0x199   :  { %v269_v30 = vmul.f32 0.03125, %v262_v28  ;;  %v268_v31 = vmul.f32 0.03125, %v259_v29  ;;  %v275_v32 = vmul.f32 %v2878_v27, %v2878_v27  ;;  %v2188_v28 = vld [vmem:[%s2735_s8] ss:$0 sm:$0xff]  ;;  %s3121_s8 = sld [smem:[#allocation11_spill]] }
 0x19b   :  { %v2882_v33 = vsub.f32 %v243_v20, %v269_v30  ;;  %v2884_v34 = vsub.f32 %v238_v17, %v268_v31  ;;  %v279_v35 = vsel %vm253_vm1, %v275_v32, 0.0 }
 0x19c   :  { %v265_v36 = vpop.xlane.xlu1 %264  ;;  %280 = vadd.xlane.f32.xlu0 %v279_v35 }
 0x19d   :  { %v270_v37 = vmul.f32 0.03125, %v265_v36  ;;  %v277_v38 = vmul.f32 %v2882_v33, %v2882_v33  ;;  %v276_v39 = vmul.f32 %v2884_v34, %v2884_v34 }
 0x19f   :  { %v2891_v40 = vsub.f32 %v248_v21, %v270_v37  ;;  %v285_v41 = vsel %vm253_vm1, %v277_v38, 0.0  ;;  %v282_v42 = vsel %vm253_vm1, %v276_v39, 0.0  ;;  %v408_v21 = vpop.f32.mrf.mxu1 }
 0x1a0   :  { %286 = vadd.xlane.f32.xlu0 %v285_v41  ;;  %283 = vadd.xlane.f32.xlu1 %v282_v42  ;;  %v409_v32 = vadd.f32 %v2188_v28, %v408_v21  ;;  %v997_v28 = vld [vmem:[%s2770_s20 + $0x8] sm:$0xff] }
 0x1a1   :  { %v278_v43 = vmul.f32 %v2891_v40, %v2891_v40  ;;  %v2379_v22 = vpop.f32.mrf.mxu1 }
 0x1a3   :  { %v288_v44 = vsel %vm253_vm1, %v278_v43, 0.0 }
 0x1a4   :  { %289 = vadd.xlane.f32.xlu1 %v288_v44 }
 0x225   :  { %v281_v55 = vpop.xlane.xlu0 %280 }
 0x226   :  { %v291_v56 = vmul.f32 0.03125, %v281_v55 }
 0x228   :  { %v295_v57 = vadd.f32 1e-05, %v291_v56 }
 0x229   :  { %v284_v58 = vpop.xlane.xlu1 %283  ;;  %v287_v59 = vpop.xlane.xlu0 %286 }
 0x22a   :  { %2579 = vrsqrt.f32 %v295_v57  ;;  %v292_v60 = vmul.f32 0.03125, %v284_v58  ;;  %v293_v61 = vmul.f32 0.03125, %v287_v59  ;;  %v861_v58 = vld [vmem:[%s2750_s24 + $0x18] sm:$0xff]  ;;  %v860_v59 = vld [vmem:[%s2750_s24 + $0x10] sm:$0xff] }
 0x22c   :  { %v296_v62 = vadd.f32 1e-05, %v292_v60  ;;  %v297_v63 = vadd.f32 1e-05, %v293_v61  ;;  %v859_v60 = vld [vmem:[%s2750_s24 + $0x8] sm:$0xff]  ;;  %v858_v61 = vld [vmem:[%s2750_s24] sm:$0xff] }
 0x22d   :  { %v290_v0 = vpop.xlane.xlu1 %289  ;;  %s3124_s24 = sld [smem:[#allocation15_spill]] }
 0x22e   :  { %2581 = vrsqrt.f32 %v296_v62  ;;  %v294_v1 = vmul.f32 0.03125, %v290_v0 }
 0x22f   :  { %2583 = vrsqrt.f32 %v297_v63 }
 0x230   :  { %v298_v2 = vadd.f32 1e-05, %v294_v1 }
 0x232   :  { %2585 = vrsqrt.f32 %v298_v2 }
 0x237   :  { %v2580_v3 = vpop.eup %2579 }
 0x238   :  { %v303_v5 = vmul.f32 %v2580_v3, %v2878_v27 }
 0x23a   :  { %v313_v7 = vmul.f32 %v2186_v4, %v303_v5 }
 0x23b   :  { %v2582_v8 = vpop.eup %2581 }
 0x23c   :  { %v2584_v9 = vpop.eup %2583  ;;  %v304_v10 = vmul.f32 %v2582_v8, %v2884_v34  ;;  %v323_v11 = vadd.f32 %v2187_v6, %v313_v7 }
 0x23d   :  { %v305_v12 = vmul.f32 %v2584_v9, %v2882_v33  ;;  %v2203_v9 = vld [vmem:[%s2755_s30] ss:$0 sm:$0xff]  ;;  %s2685_s30 = smov 64  }
 0x23e   :  { %2388 = vmatprep.mubr.msk.f32.mxu1 %vm253_vm1, %v323_v11  ;;  %v314_v13 = vmul.f32 %v2186_v4, %v304_v10 }
 0x23f   :  { %v2586_v14 = vpop.eup %2585  ;;  %v315_v15 = vmul.f32 %v2186_v4, %v305_v12 }
 0x240   :  { %v324_v16 = vadd.f32 %v2187_v6, %v314_v13  ;;  %v306_v17 = vmul.f32 %v2586_v14, %v2891_v40 }
 0x241   :  { %v325_v18 = vadd.f32 %v2187_v6, %v315_v15 }
 0x242   :  { %2389 = vmatmul.mubr.msk.f32.vlgmr.msra.gmra.mxu1 %vm253_vm1, %v324_v16  ;;  %v316_v19 = vmul.f32 %v2186_v4, %v306_v17 }
 0x243   :  { %2391 = vmatprep.mubr.msk.f32.mxu1 %vm253_vm1, %v325_v18 }
 0x244   :  { %v326_v20 = vadd.f32 %v2187_v6, %v316_v19 }
 0x246   :  { %2392 = vmatmul.mubr.msk.f32.gmra.mxu1 %vm253_vm1, %v326_v20 }
 0x247   :  { %2405 = vmatprep.mubr.msk.f32.mxu1 %vm2682_vm2, %v2681_v45 }
 0x302   :  { %v2390_v24 = vpop.f32.mrf.mxu1 }
 0x303   :  { %v507_v25 = vadd.f32 %v2390_v24, %v2190_v23 }
 0x304   :  { %v501_v26 = vpop.f32.mrf.mxu1 }
 0x305   :  { %2395 = vmatpush3.xpose.msk.msra.mxu0 %vm253_vm1, %v507_v25  ;;  %v502_v29 = vadd.f32 %v2190_v23, %v501_v26  ;;  %v999_v26 = vld [vmem:[%s2770_s20 + $0x18] sm:$0xff] }
 0x306   :  { %v2393_v27 = vpop.f32.mrf.mxu1  ;;  %2396 = vmatprep.subr.mxu0 %v2681_v45 }
 0x307   :  { %v517_v30 = vadd.f32 %v2393_v27, %v2190_v23  ;;  %v998_v27 = vld [vmem:[%s2770_s20 + $0x10] sm:$0xff] }
 0x308   :  { %v511_v31 = vpop.f32.mrf.mxu1 }
 0x309   :  { %2397 = vmatpush3.xpose.msk.msra.mxu0 %vm253_vm1, %v502_v29  ;;  %777 = vrot.lane.b32.xlu1 %v517_v30, %s2683_s0  ;;  %v512_v33 = vadd.f32 %v2190_v23, %v511_v31 }
 0x30a   :  { %2402 = vmatpush3.xpose.msk.msra.mxu1 %vm253_vm1, %v517_v30  ;;  %2408 = vmatprep.subr.mxu0 %v2681_v45 }
 0x30b   :  { %2403 = vmatprep.subr.mxu1 %v2681_v45 }
 0x30c   :  { %2399 = vmatmul.mubr.msk.f32.vlgmr.msra.gmra.mxu0 %vm253_vm1, %v409_v32 }
 0x30d   :  { %696 = vrot.lane.b32.xlu1 %v502_v29, %s2683_s0  ;;  %2412 = vmatprep.mubr.msk.f32.mxu0 %vm2682_vm2, %v2681_v45  ;;  %v996_v29 = vld [vmem:[%s2770_s20] sm:$0xff]  ;;  %s3126_s20 = sld [smem:[#allocation17_spill]] }
 0x30e   :  { %2404 = vmatpush3.xpose.msk.msra.mxu1 %vm253_vm1, %v512_v33 }
 0x30f   :  { %2415 = vmatprep.subr.mxu1 %v2681_v45 }
 0x311   :  { %2406 = vmatmul.mubr.msk.f32.vlgmr.msra.gmra.mxu1 %vm253_vm1, %v409_v32 }
 0x312   :  { %2419 = vmatprep.mubr.msk.f32.mxu1 %vm2682_vm2, %v2681_v45 }
 0x37b   :  { %v778_v34 = vpop.permute.xlu1 %777 }
 0x37c   :  { %2416 = vmatpush3.msra.mxu1 %v778_v34 }
 0x37d   :  { %2417 = vmatprep.subr.mxu1 %v2681_v45 }
 0x37f   :  { %v697_v44 = vpop.permute.xlu1 %696 }
 0x3cc   :  { %v595_v35 = vpop.f32.mrf.mxu0 }
 0x3cd   :  { %v675_v36 = vmul.f32 0.17677669, %v595_v35 }
 0x3ce   :  { %v2400_v37 = vpop.f32.mrf.mxu0 }
 0x3cf   :  { %v678_v38 = vsel %vm677_vm3, %v675_v36, -inf  ;;  %v2206_v37 = vld [vmem:[%s2760_s6] ss:$0 sm:$0xff]  ;;  %s3125_s6 = sld [smem:[#allocation16_spill]] }
 0x3d0   :  { %679 = vmax.xlane.f32.xlu0 %v678_v38 }
 0x3d1   :  { %v671_v39 = vpop.f32.mrf.mxu1 }
 0x3d2   :  { %v676_v40 = vmul.f32 0.17677669, %v671_v39  ;;  %v2207_v39 = vld [vmem:[%s3114_s5] ss:$0 sm:$0xff] }
 0x3d3   :  { %v2407_v41 = vpop.f32.mrf.mxu1 }
 0x3d4   :  { %v681_v42 = vsel %vm677_vm3, %v676_v40, -inf }
 0x3d5   :  { %682 = vmax.xlane.f32.xlu1 %v681_v42 }
 0x3e6   :  { %775 = vrot.lane.b32.xlu1 %v512_v33, %s2683_s0  ;;  %698 = vrot.lane.b32.xlu0 %v507_v25, %s2683_s0 }
 0x459   :  { %v680_v43 = vpop.xlane.xlu0 %679 }
 0x45a   :  { %v684_v46 = vsub.f32 %v675_v36, %v680_v43 }
 0x45c   :  { %v686_v47 = vmul.f32 1.442695, %v684_v46 }
 0x45d   :  { %v699_v48 = vpop.permute.xlu0 %698 }
 0x45e   :  { %2587 = vpow2.f32 %v686_v47  ;;  %v683_v49 = vpop.xlane.xlu1 %682  ;;  %2409 = vmatpush3.msra.mxu0 %v699_v48  ;;  %v1113_v47 = vld [vmem:[%s3115_s13 + $0x38] sm:$0xff]  ;;  %v1112_v48 = vld [vmem:[%s3115_s13 + $0x30] sm:$0xff] }
 0x45f   :  { %v685_v51 = vsub.f32 %v676_v40, %v683_v49  ;;  %2410 = vmatprep.subr.mxu0 %v2681_v45  ;;  %v1111_v49 = vld [vmem:[%s3115_s13 + $0x28] sm:$0xff] }
 0x460   :  { %2411 = vmatpush3.msra.mxu0 %v697_v44 }
 0x461   :  { %v688_v52 = vmul.f32 1.442695, %v685_v51  ;;  %2422 = vmatprep.subr.mxu0 %v861_v58  ;;  %v1110_v51 = vld [vmem:[%s3115_s13 + $0x20] sm:$0xff] }
 0x462   :  { %v776_v53 = vpop.permute.xlu1 %775 }
 0x463   :  { %2589 = vpow2.f32 %v688_v52  ;;  %2418 = vmatpush3.msra.mxu1 %v776_v53  ;;  %v1109_v52 = vld [vmem:[%s3115_s13 + $0x18] sm:$0xff]  ;;  %v1108_v53 = vld [vmem:[%s3115_s13 + $0x10] sm:$0xff] }
 0x464   :  { %2433 = vmatprep.subr.mxu1 %v999_v26 }
 0x46b   :  { %v2588_v54 = vpop.eup %2587 }
 0x46c   :  { %2413 = vmatmul.mubr.msk.f32.vlgmr.msra.gmra.mxu0 %vm677_vm3, %v2588_v54  ;;  %v690_v55 = vsel %vm677_vm3, %v2588_v54, 0.0  ;;  %v1107_v54 = vld [vmem:[%s3115_s13 + $0x8] sm:$0xff] }
 0x46d   :  { %691 = vadd.xlane.f32.xlu0 %v690_v55  ;;  %2423 = vmatpush3.msra.mxu0 %v861_v58  ;;  %v1106_v55 = vld [vmem:[%s3115_s13] sm:$0xff] }
 0x46e   :  { %2424 = vmatprep.subr.mxu0 %v860_v59 }
 0x46f   :  { %2425 = vmatpush3.msra.mxu0 %v860_v59 }
 0x470   :  { %v2590_v56 = vpop.eup %2589  ;;  %2426 = vmatprep.subr.mxu0 %v859_v60 }
 0x471   :  { %2420 = vmatmul.mubr.msk.f32.vlgmr.msra.gmra.mxu1 %vm677_vm3, %v2590_v56  ;;  %v693_v57 = vsel %vm677_vm3, %v2590_v56, 0.0  ;;  %2427 = vmatpush3.msra.mxu0 %v859_v60  ;;  %v2208_v56 = vld [vmem:[%s3116_s17] ss:$0 sm:$0xff] }
 0x472   :  { %694 = vadd.xlane.f32.xlu1 %v693_v57  ;;  %2428 = vmatprep.subr.mxu0 %v858_v61 }
 0x473   :  { %2429 = vmatpush3.msra.mxu0 %v858_v61  ;;  %2434 = vmatpush3.msra.mxu1 %v999_v26 }
 0x474   :  { %2435 = vmatprep.subr.mxu1 %v998_v27  ;;  %2444 = vmatprep.subr.mxu0 %v1113_v47 }
 0x475   :  { %2436 = vmatpush3.msra.mxu1 %v998_v27 }
 0x476   :  { %2437 = vmatprep.subr.mxu1 %v997_v28 }
 0x477   :  { %2438 = vmatpush3.msra.mxu1 %v997_v28 }
 0x478   :  { %2439 = vmatprep.subr.mxu1 %v996_v29 }
 0x479   :  { %2440 = vmatpush3.msra.mxu1 %v996_v29 }
 0x4f6   :  { %v692_v62 = vpop.xlane.xlu0 %691 }
 0x4f7   :  { %2591 = vrcp.f32 %v692_v62 }
 0x4fb   :  { %v695_v63 = vpop.xlane.xlu1 %694 }
 0x4fc   :  { %2593 = vrcp.f32 %v695_v63 }
 0x504   :  { %v2592_v0 = vpop.eup %2591 }
 0x509   :  { %v2594_v4 = vpop.eup %2593 }
 0x52c   :  { %v771_v1 = vpop.f32.mrf.mxu0 }
 0x52d   :  { %v856_v2 = vmul.f32 %v2592_v0, %v771_v1 }
 0x52e   :  { %v2414_v3 = vpop.f32.mrf.mxu0 }
 0x52f   :  { %2430 = vmatprep.mubr.msk.f32.mxu0 %vm253_vm1, %v856_v2 }
 0x531   :  { %v850_v5 = vpop.f32.mrf.mxu1 }
 0x532   :  { %v857_v6 = vmul.f32 %v2594_v4, %v850_v5 }
 0x533   :  { %v2421_v7 = vpop.f32.mrf.mxu1 }
 0x534   :  { %2431 = vmatmul.mubr.msk.f32.vlgmr.msra.gmra.mxu0 %vm253_vm1, %v857_v6 }
 0x535   :  { %2445 = vmatpush3.msra.mxu0 %v1113_v47 }
 0x536   :  { %2446 = vmatprep.subr.mxu0 %v1112_v48 }
 0x537   :  { %2447 = vmatpush3.msra.mxu0 %v1112_v48 }
 0x538   :  { %2448 = vmatprep.subr.mxu0 %v1111_v49 }
 0x539   :  { %2449 = vmatpush3.msra.mxu0 %v1111_v49 }
 0x53a   :  { %2450 = vmatprep.subr.mxu0 %v1110_v51 }
 0x53b   :  { %2451 = vmatpush3.msra.mxu0 %v1110_v51 }
 0x53c   :  { %2452 = vmatprep.subr.mxu0 %v1109_v52 }
 0x53d   :  { %2453 = vmatpush3.msra.mxu0 %v1109_v52  ;;  %v2215_v52 = vld [vmem:[%s3121_s8] ss:$0 sm:$0xff] }
 0x53e   :  { %2454 = vmatprep.subr.mxu0 %v1108_v53 }
 0x53f   :  { %2455 = vmatpush3.msra.mxu0 %v1108_v53 }
 0x540   :  { %2456 = vmatprep.subr.mxu0 %v1107_v54 }
 0x541   :  { %2457 = vmatpush3.msra.mxu0 %v1107_v54 }
 0x542   :  { %2458 = vmatprep.subr.mxu0 %v1106_v55 }
 0x543   :  { %2459 = vmatpush3.msra.mxu0 %v1106_v55 }
 0x5f4   :  { %v2432_v8 = vpop.f32.mrf.mxu0 }
 0x5f5   :  { %v947_v11 = vadd.f32 %v2432_v8, %v2203_v9 }
 0x5f6   :  { %v941_v10 = vpop.f32.mrf.mxu0 }
 0x5f7   :  { %v942_v12 = vadd.f32 %v2203_v9, %v941_v10  ;;  %v951_v15 = vadd.f32 %v947_v11, %v2910_v50 }
 0x5f9   :  { %v950_v13 = vadd.f32 %v942_v12, %v2910_v50  ;;  %v957_v16 = vsel %vm253_vm1, %v951_v15, 0.0 }
 0x5fb   :  { %v954_v14 = vsel %vm253_vm1, %v950_v13, 0.0 }
 0x5fc   :  { %955 = vadd.xlane.f32.xlu0 %v954_v14 }
 0x600   :  { %958 = vadd.xlane.f32.xlu0 %v957_v16 }
 0x685   :  { %v956_v17 = vpop.xlane.xlu0 %955 }
 0x686   :  { %v960_v18 = vmul.f32 0.03125, %v956_v17 }
 0x688   :  { %v962_v19 = vsub.f32 %v950_v13, %v960_v18 }
 0x689   :  { %v959_v20 = vpop.xlane.xlu0 %958 }
 0x68a   :  { %v961_v21 = vmul.f32 0.03125, %v959_v20  ;;  %v964_v22 = vmul.f32 %v962_v19, %v962_v19 }
 0x68c   :  { %v963_v23 = vsub.f32 %v951_v15, %v961_v21  ;;  %v966_v24 = vsel %vm253_vm1, %v964_v22, 0.0  ;;  %v2211_v15 = vld [vmem:[%s3117_s21] ss:$0 sm:$0xff] }
 0x68d   :  { %967 = vadd.xlane.f32.xlu0 %v966_v24 }
 0x68e   :  { %v965_v25 = vmul.f32 %v963_v23, %v963_v23 }
 0x690   :  { %v969_v50 = vsel %vm253_vm1, %v965_v25, 0.0 }
 0x691   :  { %970 = vadd.xlane.f32.xlu1 %v969_v50 }
 0x716   :  { %v968_v30 = vpop.xlane.xlu0 %967 }
 0x717   :  { %v972_v31 = vmul.f32 0.03125, %v968_v30 }
 0x719   :  { %v974_v32 = vadd.f32 1e-05, %v972_v31 }
 0x71a   :  { %v971_v33 = vpop.xlane.xlu1 %970 }
 0x71b   :  { %2595 = vrsqrt.f32 %v974_v32  ;;  %v973_v34 = vmul.f32 0.03125, %v971_v33  ;;  %v1251_v33 = vld [vmem:[%s3118_s25 + $0x18] sm:$0xff] }
 0x71c   :  { %2463 = vmatprep.subr.mxu1 %v1251_v33 }
 0x71d   :  { %v975_v35 = vadd.f32 1e-05, %v973_v34  ;;  %v1250_v34 = vld [vmem:[%s3118_s25 + $0x10] sm:$0xff] }
 0x71f   :  { %2597 = vrsqrt.f32 %v975_v35  ;;  %v1249_v35 = vld [vmem:[%s3118_s25 + $0x8] sm:$0xff] }
 0x728   :  { %v2596_v36 = vpop.eup %2595 }
 0x729   :  { %v978_v38 = vmul.f32 %v2596_v36, %v962_v19  ;;  %v1248_v36 = vld [vmem:[%s3118_s25] sm:$0xff] }
 0x72b   :  { %v986_v40 = vmul.f32 %v2206_v37, %v978_v38 }
 0x72c   :  { %v2598_v41 = vpop.eup %2597 }
 0x72d   :  { %v979_v42 = vmul.f32 %v2598_v41, %v963_v23  ;;  %v2980_v43 = vadd.f32 %v2207_v39, %v986_v40 }
 0x72f   :  { %v987_v44 = vmul.f32 %v2206_v37, %v979_v42  ;;  %2441 = vmatprep.mubr.msk.f32.mxu1 %vm253_vm1, %v2980_v43  ;;  %v1345_v37 = vld [vmem:[%s3119_s29 + $0x18] sm:$0xff] }
 0x731   :  { %v995_v46 = vadd.f32 %v2207_v39, %v987_v44 }
 0x733   :  { %2442 = vmatmul.mubr.msk.f32.vlgmr.msra.gmra.mxu1 %vm253_vm1, %v995_v46 }
 0x734   :  { %2464 = vmatpush3.msra.mxu1 %v1251_v33 }
 0x735   :  { %2465 = vmatprep.subr.mxu1 %v1250_v34 }
 0x736   :  { %2466 = vmatpush3.msra.mxu1 %v1250_v34 }
 0x737   :  { %2467 = vmatprep.subr.mxu1 %v1249_v35 }
 0x738   :  { %2468 = vmatpush3.msra.mxu1 %v1249_v35 }
 0x739   :  { %2469 = vmatprep.subr.mxu1 %v1248_v36 }
 0x73a   :  { %2470 = vmatpush3.msra.mxu1 %v1248_v36 }
 0x73b   :  { %2474 = vmatprep.subr.mxu1 %v1345_v37 }
 0x7f3   :  { %v2443_v57 = vpop.f32.mrf.mxu1 }
 0x7f4   :  { %v1085_v58 = vadd.f32 %v2443_v57, %v2208_v56  ;;  %v1343_v57 = vld [vmem:[%s3119_s29 + $0x8] sm:$0xff] }
 0x7f5   :  { %v1079_v59 = vpop.f32.mrf.mxu1 }
 0x7f6   :  { %v1089_v60 = vmul.f32 %v1085_v58, %v1085_v58  ;;  %v1080_v61 = vadd.f32 %v2208_v56, %v1079_v59  ;;  %v1344_v56 = vld [vmem:[%s3119_s29 + $0x10] sm:$0xff] }
 0x7f8   :  { %v1091_v62 = vmul.f32 %v1089_v60, %v1085_v58  ;;  %v1088_v63 = vmul.f32 %v1080_v61, %v1080_v61  ;;  %v2216_v60 = vld [vmem:[%s3122_s14] ss:$0 sm:$0xff] }
 0x7fa   :  { %v1093_v0 = vmul.f32 0.044715, %v1091_v62  ;;  %v1090_v1 = vmul.f32 %v1088_v63, %v1080_v61  ;;  %v3016_v63 = vld [vmem:[%s3123_s19] sm:$0xff] }
 0x7fc   :  { %v1095_v2 = vadd.f32 %v1093_v0, %v1085_v58  ;;  %v1092_v3 = vmul.f32 0.044715, %v1090_v1  ;;  %v3023_v1 = vld [vmem:[%s3123_s19 + $0x8] sm:$0xff] }
 0x7fe   :  { %v1097_v4 = vmul.f32 0.7978846, %v1095_v2  ;;  %v1094_v5 = vadd.f32 %v1092_v3, %v1080_v61  ;;  %v2219_v2 = vld [vmem:[%s3124_s24] ss:$0 sm:$0xff] }
 0x800   :  { %2599 = vtanh.f32 %v1097_v4  ;;  %v1096_v6 = vmul.f32 0.7978846, %v1094_v5 }
 0x802   :  { %2601 = vtanh.f32 %v1096_v6 }
 0x80d   :  { %v2600_v7 = vpop.eup %2599 }
 0x80e   :  { %v1101_v8 = vadd.f32 1.0, %v2600_v7 }
 0x80f   :  { %v2602_v9 = vpop.eup %2601 }
 0x810   :  { %v1100_v10 = vadd.f32 1.0, %v2602_v9  ;;  %v1103_v11 = vmul.f32 0.5, %v1101_v8 }
 0x812   :  { %v1102_v12 = vmul.f32 0.5, %v1100_v10  ;;  %v1105_v14 = vmul.f32 %v1103_v11, %v1085_v58  ;;  %v1342_v58 = vld [vmem:[%s3119_s29] sm:$0xff] }
 0x814   :  { %v1104_v13 = vmul.f32 %v1102_v12, %v1080_v61 }
 0x816   :  { %2460 = vmatprep.mubr.msk.f32.mxu0 %vm153_vm0, %v1104_v13 }
 0x817   :  { %2461 = vmatmul.mubr.msk.f32.vlgmr.msra.gmra.mxu0 %vm153_vm0, %v1105_v14 }
 0x8d7   :  { %v2462_v16 = vpop.f32.mrf.mxu0 }
 0x8d8   :  { %v1199_v17 = vadd.f32 %v2462_v16, %v2211_v15 }
 0x8d9   :  { %v1193_v18 = vpop.f32.mrf.mxu0 }
 0x8da   :  { %v1194_v19 = vadd.f32 %v2211_v15, %v1193_v18  ;;  %v1203_v20 = vadd.f32 %v1199_v17, %v995_v46  ;;  %v2214_v46 = vld [vmem:[%s3120_s3] ss:$0 sm:$0xff]  ;;  %v1450_v15 = vlaneseq }
 0x8dc   :  { %v1209_v21 = vsel %vm253_vm1, %v1203_v20, 0.0  ;;  %v1202_v22 = vadd.f32 %v1194_v19, %v2980_v43  ;;  %v1451_v16 = vshrl.u32 %v1450_v15, 7  ;;  %v3044_v18 = vand.u32 127, %v1450_v15 }
 0x8dd   :  { %1210 = vadd.xlane.f32.xlu1 %v1209_v21 }
 0x8de   :  { %v1206_v23 = vsel %vm253_vm1, %v1202_v22, 0.0  ;;  %v1452_v17 = vadd.s32 8, %v1451_v16  ;;  %vm1455_vm4 = vcmp.lt.s32.totalorder %v3044_v18, 8  ;;  %vm1456_vm6 = vcmp.le.s32.totalorder %v3044_v18, %v1451_v16 }
 0x8df   :  { %1207 = vadd.xlane.f32.xlu0 %v1206_v23  ;;  %vm1458_vm8 = vmor %vm1455_vm4, %vm1456_vm6 }
 0x8e0   :  { %vm1457_vm5 = vcmp.le.s32.totalorder %v3044_v18, %v1452_v17 }
 0x8e1   :  { %vm1459_vm7 = vmor %vm1455_vm4, %vm1457_vm5 }
 0x966   :  { %v1211_v24 = vpop.xlane.xlu1 %1210 }
 0x967   :  { %v1213_v25 = vmul.f32 0.03125, %v1211_v24 }
 0x968   :  { %v1208_v50 = vpop.xlane.xlu0 %1207 }
 0x969   :  { %v1215_v26 = vsub.f32 %v1203_v20, %v1213_v25  ;;  %v1212_v27 = vmul.f32 0.03125, %v1208_v50  ;;  %v2684_v20 = vmov -1e+09  }
 0x96a   :  { %v1461_v21 = vsel %vm1459_vm7, 0.0, %v2684_v20  ;;  %v1460_v24 = vsel %vm1458_vm8, 0.0, %v2684_v20 }
 0x96b   :  { %v1214_v28 = vsub.f32 %v1202_v22, %v1212_v27  ;;  %v1217_v29 = vmul.f32 %v1215_v26, %v1215_v26 }
 0x96d   :  { %v1221_v30 = vsel %vm253_vm1, %v1217_v29, 0.0  ;;  %v1216_v31 = vmul.f32 %v1214_v28, %v1214_v28 }
 0x96e   :  { %1222 = vadd.xlane.f32.xlu1 %v1221_v30 }
 0x96f   :  { %v1218_v32 = vsel %vm253_vm1, %v1216_v31, 0.0 }
 0x970   :  { %1219 = vadd.xlane.f32.xlu0 %v1218_v32 }
 0x9f7   :  { %v1223_v38 = vpop.xlane.xlu1 %1222 }
 0x9f8   :  { %v1225_v39 = vmul.f32 0.03125, %v1223_v38 }
 0x9f9   :  { %v1220_v40 = vpop.xlane.xlu0 %1219 }
 0x9fa   :  { %v1227_v41 = vadd.f32 1e-05, %v1225_v39  ;;  %v1224_v42 = vmul.f32 0.03125, %v1220_v40 }
 0x9fc   :  { %2603 = vrsqrt.f32 %v1227_v41  ;;  %v1226_v43 = vadd.f32 1e-05, %v1224_v42 }
 0x9fe   :  { %2605 = vrsqrt.f32 %v1226_v43 }
 0xa09   :  { %v2604_v44 = vpop.eup %2603 }
 0xa0a   :  { %v1231_v47 = vmul.f32 %v2604_v44, %v1215_v26 }
 0xa0b   :  { %v2606_v48 = vpop.eup %2605 }
 0xa0c   :  { %v1230_v49 = vmul.f32 %v2606_v48, %v1214_v28  ;;  %v1239_v51 = vmul.f32 %v2214_v46, %v1231_v47 }
 0xa0e   :  { %v1238_v53 = vmul.f32 %v2214_v46, %v1230_v49  ;;  %v1247_v55 = vadd.f32 %v2215_v52, %v1239_v51 }
 0xa10   :  { %v1246_v54 = vadd.f32 %v2215_v52, %v1238_v53 }
 0xa12   :  { %2471 = vmatprep.mubr.msk.f32.mxu1 %vm253_vm1, %v1246_v54 }
 0xa13   :  { %2472 = vmatmul.mubr.msk.f32.vlgmr.msra.gmra.mxu1 %vm253_vm1, %v1247_v55 }
 0xa14   :  { %2475 = vmatpush3.msra.mxu1 %v1345_v37 }
 0xa15   :  { %2476 = vmatprep.subr.mxu1 %v1344_v56 }
 0xa16   :  { %2477 = vmatpush3.msra.mxu1 %v1344_v56 }
 0xa17   :  { %2478 = vmatprep.subr.mxu1 %v1343_v57 }
 0xa18   :  { %2479 = vmatpush3.msra.mxu1 %v1343_v57 }
 0xa19   :  { %2480 = vmatprep.subr.mxu1 %v1342_v58 }
 0xa1a   :  { %2481 = vmatpush3.msra.mxu1 %v1342_v58 }
 0xad3   :  { %v2473_v59 = vpop.f32.mrf.mxu1 }
 0xad4   :  { %v1337_v0 = vadd.f32 %v2473_v59, %v2216_v60 }
 0xad5   :  { %v1331_v61 = vpop.f32.mrf.mxu1 }
 0xad6   :  { %v1332_v62 = vadd.f32 %v2216_v60, %v1331_v61 }
 0xad8   :  { %2482 = vmatprep.mubr.msk.f32.mxu1 %vm253_vm1, %v1332_v62 }
 0xad9   :  { %2483 = vmatmul.mubr.msk.f32.vlgmr.msra.gmra.mxu1 %vm253_vm1, %v3016_v63 }
 0xada   :  { %2485 = vmatprep.mubr.msk.f32.mxu1 %vm253_vm1, %v1337_v0  ;;  %v1869_v0 = vld [vmem:[%s3125_s6 + $0x18] sm:$0xff] }
 0xadd   :  { %2486 = vmatmul.mubr.msk.f32.gmra.mxu1 %vm253_vm1, %v3023_v1 }
 0xb99   :  { %v2484_v3 = vpop.f32.mrf.mxu1 }
 0xb9a   :  { %v1437_v4 = vadd.f32 %v2484_v3, %v2219_v2  ;;  %v1867_v3 = vld [vmem:[%s3125_s6 + $0x8] sm:$0xff] }
 0xb9b   :  { %v1431_v5 = vpop.f32.mrf.mxu1 }
 0xb9c   :  { %v1432_v6 = vadd.f32 %v2219_v2, %v1431_v5  ;;  %1466 = vrot.lane.b32.xlu0 %v1437_v4, %s2683_s0 }
 0xb9d   :  { %v2487_v7 = vpop.f32.mrf.mxu1 }
 0xb9e   :  { %v1447_v8 = vadd.f32 %v2487_v7, %v2219_v2  ;;  %1464 = vrot.lane.b32.xlu1 %v1432_v6, %s2683_s0  ;;  %2492 = vmatprep.mubr.msk.f32.mxu0 %vm253_vm1, %v1432_v6 }
 0xb9f   :  { %v1441_v9 = vpop.f32.mrf.mxu1 }
 0xba0   :  { %v1442_v10 = vadd.f32 %v2219_v2, %v1441_v9  ;;  %v1868_v2 = vld [vmem:[%s3125_s6 + $0x10] sm:$0xff] }
 0xba2   :  { %2499 = vmatprep.mubr.msk.f32.mxu1 %vm253_vm1, %v1442_v10  ;;  %1555 = vrot.lane.b32.xlu1 %v1447_v8, %s2683_s0 }
 0xba6   :  { %1553 = vrot.lane.b32.xlu1 %v1442_v10, %s2683_s0 }
 0xc0e   :  { %v1467_v11 = vpop.permute.xlu0 %1466 }
 0xc0f   :  { %2488 = vmatprep.subr.msk.mxu0 %vm253_vm1, %v1467_v11 }
 0xc10   :  { %2489 = vmatpush3.xpose.msk.msra.mxu0 %vm253_vm1, %v1467_v11  ;;  %v1465_v12 = vpop.permute.xlu1 %1464 }
 0xc11   :  { %2490 = vmatprep.subr.msk.mxu0 %vm253_vm1, %v1465_v12 }
 0xc14   :  { %2491 = vmatpush3.xpose.msk.msra.mxu0 %vm253_vm1, %v1465_v12  ;;  %v1556_v13 = vpop.permute.xlu1 %1555 }
 0xc15   :  { %2495 = vmatprep.subr.msk.mxu1 %vm253_vm1, %v1556_v13 }
 0xc16   :  { %2496 = vmatpush3.xpose.msk.msra.mxu1 %vm253_vm1, %v1556_v13 }
 0xc17   :  { %2493 = vmatmul.mubr.msk.f32.vlgmr.msra.gmra.mxu0 %vm253_vm1, %v1437_v4 }
 0xc18   :  { %v1554_v14 = vpop.permute.xlu1 %1553 }
 0xc19   :  { %2497 = vmatprep.subr.msk.mxu1 %vm253_vm1, %v1554_v14 }
 0xc1a   :  { %2498 = vmatpush3.xpose.msk.msra.mxu1 %vm253_vm1, %v1554_v14 }
 0xc1d   :  { %2500 = vmatmul.mubr.msk.f32.vlgmr.msra.gmra.mxu1 %vm253_vm1, %v1447_v8 }
 0xcd7   :  { %v2494_v19 = vpop.f32.mrf.mxu0 }
 0xcd8   :  { %v1641_v22 = vmul.f32 0.17677669, %v2494_v19 }
 0xcd9   :  { %v1542_v23 = vpop.f32.mrf.mxu0 }
 0xcda   :  { %v1640_v25 = vmul.f32 0.17677669, %v1542_v23  ;;  %v1645_v50 = vadd.f32 %v1641_v22, %v1461_v21  ;;  %v2236_v22 = vld [vmem:[%s3126_s20] ss:$0 sm:$0xff] }
 0xcdc   :  { %v1651_v26 = vsel %vm677_vm3, %v1645_v50, -inf  ;;  %v1644_v27 = vadd.f32 %v1640_v25, %v1460_v24 }
 0xcdd   :  { %v2501_v28 = vpop.f32.mrf.mxu1  ;;  %1652 = vmax.xlane.f32.xlu1 %v1651_v26 }
 0xcde   :  { %v1643_v29 = vmul.f32 0.17677669, %v2501_v28  ;;  %v1648_v30 = vsel %vm677_vm3, %v1644_v27, -inf }
 0xcdf   :  { %v1631_v31 = vpop.f32.mrf.mxu1  ;;  %1649 = vmax.xlane.f32.xlu0 %v1648_v30 }
 0xce0   :  { %v1642_v32 = vmul.f32 0.17677669, %v1631_v31  ;;  %v1647_v33 = vadd.f32 %v1643_v29, %v1461_v21 }
 0xce2   :  { %v1657_v34 = vsel %vm677_vm3, %v1647_v33, -inf  ;;  %v1646_v35 = vadd.f32 %v1642_v32, %v1460_v24 }
 0xce3   :  { %1658 = vmax.xlane.f32.xlu0 %v1657_v34 }
 0xce4   :  { %v1654_v36 = vsel %vm677_vm3, %v1646_v35, -inf }
 0xce7   :  { %1655 = vmax.xlane.f32.xlu0 %v1654_v36 }
 0xcee   :  { %1684 = vrot.lane.b32.xlu1 %v1432_v6, %s2685_s30 }
 0xcf2   :  { %1773 = vrot.lane.b32.xlu1 %v1447_v8, %s2685_s30 }
 0xcf6   :  { %1771 = vrot.lane.b32.xlu1 %v1442_v10, %s2685_s30 }
 0xcfd   :  { %1686 = vrot.lane.b32.xlu0 %v1437_v4, %s2685_s30  ;;  %v1866_v4 = vld [vmem:[%s3125_s6] sm:$0xff] }
 0xd66   :  { %v1653_v37 = vpop.xlane.xlu1 %1652 }
 0xd67   :  { %v1661_v38 = vsub.f32 %v1645_v50, %v1653_v37 }
 0xd68   :  { %v1650_v39 = vpop.xlane.xlu0 %1649 }
 0xd69   :  { %v1666_v40 = vmul.f32 1.442695, %v1661_v38  ;;  %v1660_v41 = vsub.f32 %v1644_v27, %v1650_v39 }
 0xd6a   :  { %v1685_v42 = vpop.permute.xlu1 %1684 }
 0xd6b   :  { %2607 = vpow2.f32 %v1666_v40  ;;  %v1664_v43 = vmul.f32 1.442695, %v1660_v41  ;;  %v2020_v41 = vld [vmem:[%s2840_s4 + $0x10] sm:$0xff] }
 0xd6c   :  { %v1659_v44 = vpop.xlane.xlu0 %1658 }
 0xd6d   :  { %2609 = vpow2.f32 %v1664_v43  ;;  %v1663_v46 = vsub.f32 %v1647_v33, %v1659_v44  ;;  %v2018_v43 = vld [vmem:[%s2840_s4] sm:$0xff] }
 0xd6e   :  { %v1774_v47 = vpop.permute.xlu1 %1773 }
 0xd6f   :  { %2509 = vmatprep.subr.mxu1 %v1774_v47  ;;  %v1670_v51 = vmul.f32 1.442695, %v1663_v46 }
 0xd70   :  { %2510 = vmatpush3.msra.mxu1 %v1774_v47  ;;  %v1656_v48 = vpop.xlane.xlu0 %1655 }
 0xd71   :  { %v1662_v49 = vsub.f32 %v1646_v35, %v1656_v48 }
 0xd72   :  { %v1772_v52 = vpop.permute.xlu1 %1771 }
 0xd73   :  { %v1668_v53 = vmul.f32 1.442695, %v1662_v49  ;;  %2511 = vmatprep.subr.mxu1 %v1772_v52 }
 0xd74   :  { %2512 = vmatpush3.msra.mxu1 %v1772_v52  ;;  %v1687_v54 = vpop.permute.xlu0 %1686 }
 0xd75   :  { %2611 = vpow2.f32 %v1668_v53  ;;  %2502 = vmatprep.subr.mxu0 %v1687_v54  ;;  %2530 = vmatprep.subr.mxu1 %v2681_v45 }
 0xd76   :  { %2613 = vpow2.f32 %v1670_v51  ;;  %2503 = vmatpush3.msra.mxu0 %v1687_v54  ;;  %v2241_v54 = vld [vmem:[%s3127_s28] ss:$0 sm:$0xff] }
 0xd77   :  { %2504 = vmatprep.subr.mxu0 %v1685_v42 }
 0xd78   :  { %v2608_v55 = vpop.eup %2607  ;;  %2505 = vmatpush3.msra.mxu0 %v1685_v42  ;;  %v2019_v42 = vld [vmem:[%s2840_s4 + $0x8] sm:$0xff] }
 0xd79   :  { %v1675_v56 = vsel %vm677_vm3, %v2608_v55, 0.0  ;;  %2516 = vmatprep.subr.mxu0 %v1869_v0 }
 0xd7a   :  { %v2610_v57 = vpop.eup %2609  ;;  %1676 = vadd.xlane.f32.xlu1 %v1675_v56 }
 0xd7b   :  { %2506 = vmatprep.mubr.msk.f32.mxu0 %vm677_vm3, %v2610_v57  ;;  %v1672_v58 = vsel %vm677_vm3, %v2610_v57, 0.0  ;;  %v2242_v57 = vld [vmem:[%s3128_s1] ss:$0 sm:$0xff] }
 0xd7c   :  { %1673 = vadd.xlane.f32.xlu0 %v1672_v58  ;;  %2507 = vmatmul.mubr.msk.f32.vlgmr.msra.gmra.mxu0 %vm677_vm3, %v2608_v55 }
 0xd7d   :  { %2517 = vmatpush3.msra.mxu0 %v1869_v0 }
 0xd7e   :  { %2518 = vmatprep.subr.mxu0 %v1868_v2 }
 0xd7f   :  { %2519 = vmatpush3.msra.mxu0 %v1868_v2  ;;  %v2243_v2 = vld [vmem:[%s2845_s9] ss:$0 sm:$0xff]  ;;  %s2686_s9 = smov [#allocation2]  }
 0xd80   :  { %2520 = vmatprep.subr.mxu0 %v1867_v3 }
 0xd81   :  { %2521 = vmatpush3.msra.mxu0 %v1867_v3 }
 0xd82   :  { %v2612_v59 = vpop.eup %2611  ;;  %2522 = vmatprep.subr.mxu0 %v1866_v4 }
 0xd83   :  { %v2614_v60 = vpop.eup %2613  ;;  %2513 = vmatprep.mubr.msk.f32.mxu1 %vm677_vm3, %v2612_v59  ;;  %v1678_v61 = vsel %vm677_vm3, %v2612_v59, 0.0  ;;  %2523 = vmatpush3.msra.mxu0 %v1866_v4 }
 0xd84   :  { %2514 = vmatmul.mubr.msk.f32.vlgmr.msra.gmra.mxu1 %vm677_vm3, %v2614_v60  ;;  %1679 = vadd.xlane.f32.xlu0 %v1678_v61  ;;  %v1681_v62 = vsel %vm677_vm3, %v2614_v60, 0.0 }
 0xd85   :  { %2538 = vmatprep.mubr.msk.f32.mxu1 %vm2682_vm2, %v2681_v45 }
 0xd88   :  { %1682 = vadd.xlane.f32.xlu0 %v1681_v62 }
 0xe03   :  { %v1677_v6 = vpop.xlane.xlu1 %1676 }
 0xe05   :  { %v1674_v5 = vpop.xlane.xlu0 %1673 }
 0xe06   :  { %2615 = vrcp.f32 %v1674_v5 }
 0xe07   :  { %2617 = vrcp.f32 %v1677_v6 }
 0xe0d   :  { %v1680_v7 = vpop.xlane.xlu0 %1679 }
 0xe0e   :  { %2619 = vrcp.f32 %v1680_v7 }
 0xe11   :  { %v1683_v8 = vpop.xlane.xlu0 %1682 }
 0xe12   :  { %2621 = vrcp.f32 %v1683_v8 }
 0xe13   :  { %v2616_v10 = vpop.eup %2615 }
 0xe14   :  { %v2618_v12 = vpop.eup %2617 }
 0xe1b   :  { %v2620_v16 = vpop.eup %2619 }
 0xe1f   :  { %v2622_v19 = vpop.eup %2621 }
 0xe3c   :  { %v2508_v9 = vpop.f32.mrf.mxu0 }
 0xe3d   :  { %v1863_v14 = vmul.f32 %v2618_v12, %v2508_v9 }
 0xe3e   :  { %v1762_v11 = vpop.f32.mrf.mxu0 }
 0xe3f   :  { %v1862_v13 = vmul.f32 %v2616_v10, %v1762_v11 }
 0xe41   :  { %2524 = vmatprep.mubr.msk.f32.mxu0 %vm253_vm1, %v1862_v13 }
 0xe42   :  { %2525 = vmatmul.mubr.msk.f32.vlgmr.msra.gmra.mxu0 %vm253_vm1, %v1863_v14 }
 0xe44   :  { %v2515_v15 = vpop.f32.mrf.mxu1 }
 0xe45   :  { %v1865_v21 = vmul.f32 %v2622_v19, %v2515_v15 }
 0xe46   :  { %v1849_v17 = vpop.f32.mrf.mxu1 }
 0xe47   :  { %v1864_v20 = vmul.f32 %v2620_v16, %v1849_v17 }
 0xe49   :  { %2527 = vmatprep.mubr.msk.f32.mxu0 %vm253_vm1, %v1864_v20 }
 0xe4a   :  { %2528 = vmatmul.mubr.msk.f32.gmra.mxu0 %vm253_vm1, %v1865_v21 }
 0xf02   :  { %v2526_v23 = vpop.f32.mrf.mxu0 }
 0xf03   :  { %v1960_v24 = vadd.f32 %v2526_v23, %v2236_v22 }
 0xf04   :  { %v1955_v25 = vpop.f32.mrf.mxu0 }
 0xf05   :  { %v1972_v50 = vadd.f32 %v1960_v24, %v3016_v63 }
 0xf07   :  { %v1976_v26 = vsel %vm253_vm1, %v1972_v50, 0.0 }
 0xf08   :  { %1977 = vadd.xlane.f32.xlu0 %v1976_v26 }
 0xf0a   :  { %v2529_v27 = vpop.f32.mrf.mxu0 }
 0xf0b   :  { %v1969_v28 = vadd.f32 %v2529_v27, %v2236_v22 }
 0xf0c   :  { %v1964_v29 = vpop.f32.mrf.mxu0 }
 0xf0d   :  { %v1973_v30 = vadd.f32 %v1969_v28, %v3023_v1  ;;  %v2021_v1 = vld [vmem:[%s2840_s4 + $0x18] sm:$0xff]  ;;  %s2137_s4 = sshll.u32 %s2686_s9, 4  ;;  %s2138_s4 = int_to_ptr.vmem [resolvable:$true] %s2137_s4 }
 0xf0e   :  { %2531 = vmatpush3.msra.mxu1 %v2021_v1  ;;  %s2627_s2 = scalar_lea.vmem %s2138_s4, 32  ;;  %p2632_p1 = scmp.lt.s32.totalorder %s2138_s4, %s2138_s4 }
 0xf0f   :  { %v1979_v31 = vsel %vm253_vm1, %v1973_v30, 0.0  ;;  %2532 = vmatprep.subr.mxu1 %v2681_v45  ;;  %p2628_p0 = scmp.ne.s32.totalorder %s2138_s4, %s2627_s2  ;;  %p2633_p2 = scmp.lt.s32.totalorder %s2627_s2, %s2627_s2 }
 0xf10   :  { %1980 = vadd.xlane.f32.xlu1 %v1979_v31  ;;  %2533 = vmatpush3.msra.mxu1 %v2020_v41 }
 0xf11   :  { %2534 = vmatprep.subr.mxu1 %v2681_v45  ;;  %p2634_p3 = por %p2633_p2, %p2632_p1 }
 0xf12   :  { %2535 = vmatpush3.msra.mxu1 %v2019_v42 }
 0xf13   :  { %2536 = vmatprep.subr.mxu1 %v2681_v45  ;;  %p2635_p4 = pnand %p2634_p3, %p2628_p0 }
 0xf14   :  { %2537 = vmatpush3.msra.mxu1 %v2018_v43 }
 0xf91   :  { %v1978_v32 = vpop.xlane.xlu0 %1977 }
 0xf92   :  { %v1982_v33 = vmul.f32 0.03125, %v1978_v32 }
 0xf94   :  { %v1984_v34 = vsub.f32 %v1972_v50, %v1982_v33 }
 0xf96   :  { %v1986_v35 = vmul.f32 %v1984_v34, %v1984_v34 }
 0xf98   :  { %v1988_v63 = vsel %vm253_vm1, %v1986_v35, 0.0 }
 0xf99   :  { %v1981_v36 = vpop.xlane.xlu1 %1980  ;;  %1989 = vadd.xlane.f32.xlu0 %v1988_v63 }
 0xf9a   :  { %v1983_v37 = vmul.f32 0.03125, %v1981_v36 }
 0xf9c   :  { %v1985_v38 = vsub.f32 %v1973_v30, %v1983_v37 }
 0xf9e   :  { %v1987_v39 = vmul.f32 %v1985_v38, %v1985_v38 }
 0xfa0   :  { %v1991_v40 = vsel %vm253_vm1, %v1987_v39, 0.0 }
 0xfa1   :  { %1992 = vadd.xlane.f32.xlu1 %v1991_v40 }
0x1022   :  { %v1990_v44 = vpop.xlane.xlu0 %1989 }
0x1023   :  { %v1994_v46 = vmul.f32 0.03125, %v1990_v44 }
0x1025   :  { %v1996_v47 = vadd.f32 1e-05, %v1994_v46 }
0x1027   :  { %2623 = vrsqrt.f32 %v1996_v47 }
0x102a   :  { %v1993_v48 = vpop.xlane.xlu1 %1992 }
0x102b   :  { %v1995_v49 = vmul.f32 0.03125, %v1993_v48 }
0x102d   :  { %v1997_v51 = vadd.f32 1e-05, %v1995_v49 }
0x102f   :  { %2625 = vrsqrt.f32 %v1997_v51 }
0x1034   :  { %v2624_v52 = vpop.eup %2623 }
0x1035   :  { %v2000_v53 = vmul.f32 %v2624_v52, %v1984_v34 }
0x1037   :  { %v2008_v55 = vmul.f32 %v2241_v54, %v2000_v53 }
0x1039   :  { %v2016_v60 = vadd.f32 %v2242_v57, %v2008_v55 }
0x103b   :  { %v2031_v61 = vrot.slane %v2016_v60, 7 }
0x103c   :  { %v2626_v56 = vpop.eup %2625 }
0x103d   :  { %v2001_v58 = vmul.f32 %v2626_v56, %v1985_v38 }
0x103f   :  { %v2009_v59 = vmul.f32 %v2241_v54, %v2001_v58 }
0x1041   :  { %v2017_v45 = vadd.f32 %v2242_v57, %v2009_v59 }
0x1043   :  { %v2032_v62 = vrot.slane %v2017_v45, 6 }
0x1045   :  { %v2034_v0 = vsel %vm2033_vm9, %v2032_v62, %v2031_v61 }
0x1046   :  { %2539 = vmatmul.mubr.msk.f32.vlgmr.msra.gmra.mxu1 %vm253_vm1, %v2034_v0 }
0x1106   :  { %v2103_v3 = vpop.f32.mrf.mxu1 }
0x1107   :  { %v2104_v4 = vadd.f32 %v2243_v2, %v2103_v3 }
0x1108   :  { %v2540_v5 = vpop.f32.mrf.mxu1 }
0x1109   :  { %v2109_v6 = vsel %vm2107_vm10, %v2104_v4, -inf  ;;  %2108 = vst.msk [vmem:[#allocation2] sm:$0x3] %vm2107_vm10, %v2104_v4 }
0x110a   :  { %2110 = vmax.xlane.f32.xlu0 %v2109_v6 }
0x1193   :  { %v2111_v7 = vpop.xlane.xlu0 %2110 }
0x1194   :  { %vm2112_vm11 = vcmp.eq.f32.partialorder %v2104_v4, %v2111_v7 }
0x1195   :  { %v2113_v8 = vsel %vm2112_vm11, %v3044_v18, 64 }
0x1196   :  { %v2114_v9 = vsel %vm2107_vm10, %v2113_v8, 2147483647 }
0x1197   :  { %v2116_v10 = vshra.s32 %v2114_v9, 16  ;;  %v2115_v12 = vand.u32 65535, %v2114_v9 }
0x1199   :  { %v2118_v11 = vcvt.s32.f32 %v2116_v10  ;;  %v2117_v14 = vcvt.s32.f32 %v2115_v12 }
0x119b   :  { %2119 = vmin.xlane.f32.xlu1 %v2118_v11 }
0x1224   :  { %v2120_v13 = vpop.xlane.xlu1 %2119 }
0x1225   :  { %vm2121_vm12 = vcmp.eq.f32.partialorder %v2118_v11, %v2120_v13 }
0x1226   :  { %v2122_v15 = vsel %vm2121_vm12, %v2117_v14, inf }
0x1227   :  { %2123 = vmin.xlane.f32.xlu0 %v2122_v15 }
0x1228   :  { %2638 = shalt.err (!%p2635_p4)
}
0x1229   :  { %2140 = dma.vmem_to_hbm [thread:$0]  %s2138_s4, 32, %s2850_s12, [#allocation3]   ;;  %v2126_v18 = vcvt.f32.s32 %v2120_v13  ;;  %vm2129_vm13 = vcmask 1024  }
0x122b   :  { %v2127_v17 = vshll.u32 %v2126_v18, 16 }
0x12b0   :  { %v2124_v16 = vpop.xlane.xlu0 %2123 }
0x12b1   :  { %v2125_v19 = vcvt.f32.s32 %v2124_v16 }
0x12b3   :  { %v2128_v20 = vadd.s32 %v2127_v17, %v2125_v19 }
0x12b5   :  { %2130 = vst.msk [vmem:[%s2855_s27] sm:$0x3] %vm2129_vm13, %v2128_v20 }
0x12b6   :  { %2647 = dma.done.wait [#allocation3], 32  }
0x12b7   :  { %2648 = vsyncadd [#allocation3], 4294967264 }
0x12b8   :  { %2148 = vsyncpa [#allocation3], 1 }

</bundles_post_ra>
